<compile_context>
chip_gen: v6e
topology: v6e:2x2x1
jax: 0.10.0
libtpu: 0.0.40
codegen_flags: <defaults>
</compile_context>

<pallas_src>
import functools
import math

import jax
import jax.numpy as jnp
from jax.experimental import pallas as pl
from jax.experimental.pallas import tpu as pltpu


def _round_up(a, b):
    return (a + b - 1) // b * b


def _cdiv(a, b):
    return (a + b - 1) // b


def _vmem_capacity_bytes():
    """Per-TensorCore VMEM capacity (falls back to the v5e/v6e 128 MiB)."""
    try:
        info = pltpu.get_tpu_info()
        cap = getattr(info, "vmem_capacity_bytes", None)
        if cap:
            return int(cap)
    except Exception:
        pass
    return 128 << 20


def mlstm_kernel(x_ref, w_ref, b_ref, cprev_ref, nprev_ref,
                 ht_ref, c_ref, n_ref, *, mem_dim):
    m = mem_dim

    x = x_ref[...]                                                   # (tn, d)

    # One fused projection -- the ONLY MXU op in the kernel.
    # Columns: [q | k/sqrt(m) | v | o | i | f | 0-pad].
    proj = jnp.dot(x, w_ref[...], preferred_element_type=jnp.float32) + b_ref[...]
    q = proj[:, 0:m]                                                 # (tn, m)
    k = proj[:, m:2 * m]                                             # (tn, m) pre-scaled
    v = proj[:, 2 * m:3 * m]                                         # (tn, m)
    o = jax.nn.sigmoid(proj[:, 3 * m:4 * m])                         # (tn, m)
    i_g = jnp.exp(proj[:, 4 * m:4 * m + 1])                          # (tn, 1)
    f_g = jax.nn.sigmoid(proj[:, 4 * m + 1:4 * m + 2])               # (tn, 1)

    iv = i_g * v                                                     # fold input gate into v
    c_prev = cprev_ref[...]                                          # (tn, m*m) lane-dense

    # Per-row matrix memory update, one m-lane group (= one row `a` of the
    # m x m memory C) at a time.  Only VPU/XLU work: static lane slices,
    # row-scalar broadcasts, lane reductions and a lane-dense concatenate --
    # no 0/1 selection matmuls on the MXU.
    c_cols = []
    h_cols = []
    for a in range(m):
        c_prev_a = c_prev[:, a * m:(a + 1) * m]                      # (tn, m)
        # C[a, :] = f * C_prev[a, :] + (i * v[a]) * k
        c_new_a = f_g * c_prev_a + iv[:, a:a + 1] * k                # (tn, m)
        c_cols.append(c_new_a)
        # (C @ q)[a] = sum_b C[a, b] * q[b]
        h_cols.append(jnp.sum(c_new_a * q, axis=-1, keepdims=True))  # (tn, 1)
    c_new = jnp.concatenate(c_cols, axis=1)                          # (tn, m*m)
    h_num = jnp.concatenate(h_cols, axis=1)                          # (tn, m)

    # n = f * n_prev + i * k ; denominator max(|n . q|, 1)
    n_new = f_g * nprev_ref[...] + i_g * k                           # (tn, m)
    nq = jnp.abs(jnp.sum(n_new * q, axis=-1, keepdims=True))         # (tn, 1)
    inv = pl.reciprocal(jnp.maximum(nq, 1.0), approx=False)

    ht_ref[...] = o * (h_num * inv)
    c_ref[...] = c_new                  # single full-width lane-dense store
    n_ref[...] = n_new


def prepare_mlstm_params(params):
    """Build the fused projection weight/bias once (hoisted out of the
    per-step call):  [Wq | Wk/sqrt(m) | Wv | Wo | wi | wf | 0-pad]."""
    d, m = params["Wq"].shape
    P = _round_up(4 * m + 2, 128)
    inv_sqrt_m = 1.0 / math.sqrt(m)
    w_fused = jnp.concatenate(
        [params["Wq"], params["Wk"] * inv_sqrt_m, params["Wv"], params["Wo"],
         params["wi"], params["wf"],
         jnp.zeros((d, P - (4 * m + 2)), jnp.float32)], axis=1)
    b_fused = jnp.concatenate(
        [params["bq"][0], params["bk"][0] * inv_sqrt_m, params["bv"][0],
         params["bo"][0], params["bi"], params["bf"],
         jnp.zeros((P - (4 * m + 2),), jnp.float32)]).reshape(1, P)
    return w_fused, b_fused


@functools.partial(jax.jit, static_argnames=("row_tile",))
def mlstm_pallas(x, C_prev, n_prev, w_fused, b_fused, row_tile=None):
    T, B, d = x.shape
    m = n_prev.shape[2]
    mm = m * m
    N = T * B
    P = w_fused.shape[1]

    # ---- generation-aware tile / VMEM sizing --------------------------------
    vmem_cap = _vmem_capacity_bytes()
    vmem_budget = min(int(vmem_cap * 0.7), 96 << 20)   # ~44 MiB v7x, ~89 MiB v5e/v6e
    if row_tile is None:
        row_tile = 512 if vmem_cap >= (96 << 20) else 256
    row_tile = max(8, _round_up(row_tile, 8))

    # Per-row VMEM: double-buffered pipeline blocks + in-kernel f32 temporaries.
    pipe_row = 2 * (2 * mm + d + 3 * m) * 4
    live_row = 6 * mm * 4
    fixed = 2 * (d * P + P) * 4
    fit_rows = max(8, (vmem_budget - fixed) // (pipe_row + live_row))
    row_tile = min(row_tile, max(8, (fit_rows // 8) * 8))
    # Keep >= ~4 grid steps when N allows so both v7x TensorCores get work.
    row_tile = min(row_tile, max(8, _round_up(_cdiv(N, 4), 8)))
    row_tile = max(8, row_tile)

    grid = (_cdiv(N, row_tile),)
    vmem_limit = int(min(vmem_budget,
                         max(32 << 20,
                             int(1.25 * (fixed + row_tile * (pipe_row + live_row))))))

    # Free (view) reshapes -- no padding round-trip over the C state, so the
    # C_prev -> C / n_prev -> n aliases see the caller's buffers directly.
    x2 = x.reshape(N, d)
    c2 = C_prev.reshape(N, mm)          # lane-dense state layout (m*m % 128 == 0)
    n2 = n_prev.reshape(N, m)

    def bcast_spec(shape):
        nd = len(shape)
        return pl.BlockSpec(shape, lambda i, nd=nd: (0,) * nd)

    def row_spec(cols):
        return pl.BlockSpec((row_tile, cols), lambda i: (i, 0))

    in_specs = [
        row_spec(d),            # x
        bcast_spec((d, P)),     # fused weights
        bcast_spec((1, P)),     # fused bias
        row_spec(mm),           # C_prev (lane-dense)
        row_spec(m),            # n_prev
    ]
    out_specs = (row_spec(m), row_spec(mm), row_spec(m))
    out_shape = (
        jax.ShapeDtypeStruct((N, m), jnp.float32),    # ht
        jax.ShapeDtypeStruct((N, mm), jnp.float32),   # C
        jax.ShapeDtypeStruct((N, m), jnp.float32),    # n
    )

    kernel = functools.partial(mlstm_kernel, mem_dim=m)
    ht2, c_out, n_out = pl.pallas_call(
        kernel,
        grid=grid,
        in_specs=in_specs,
        out_specs=out_specs,
        out_shape=out_shape,
        # State is updated in place when the caller donates it (XLA inserts a
        # copy otherwise, so it is always correct).
        input_output_aliases={3: 1, 4: 2},
        compiler_params=pltpu.CompilerParams(
            dimension_semantics=("parallel",),
            vmem_limit_bytes=vmem_limit),
    )(x2, w_fused, b_fused, c2, n2)

    return (ht2.reshape(T, B, m),
            (c_out.reshape(T, B, m, m), n_out.reshape(T, B, m)))


def mlstm_ref(x, C_prev, n_prev, p):
    """Pure-JAX reference mirroring the PyTorch forward exactly."""
    m = p["Wq"].shape[1]
    qt = x @ p["Wq"] + p["bq"]
    kt = (x @ p["Wk"] + p["bk"]) / math.sqrt(m)
    vt = x @ p["Wv"] + p["bv"]
    it = jnp.exp(x @ p["wi"] + p["bi"])[..., None]          # (T, B, 1, 1)
    ft = jax.nn.sigmoid(x @ p["wf"] + p["bf"])[..., None]   # (T, B, 1, 1)
    C = ft * C_prev + it * (vt[..., :, None] * kt[..., None, :])
    n = ft[..., 0] * n_prev + it[..., 0] * kt
    max_nqt = jnp.maximum(jnp.abs(jnp.sum(n * qt, axis=-1, keepdims=True)), 1.0)
    h_tilde = jnp.einsum("tbij,tbj->tbi", C, qt) / max_nqt
    ot = jax.nn.sigmoid(x @ p["Wo"] + p["bo"])
    return ot * h_tilde, (C, n)


def init_params(key, input_size, mem_dim):
    """Deterministic xavier-uniform-like init for >=2D params, zeros for 1D."""
    def xavier(k, shape):
        bound = math.sqrt(6.0 / (shape[0] + shape[1]))
        return jax.random.uniform(k, shape, jnp.float32, -bound, bound)

    keys = jax.random.split(key, 10)
    return {
        "Wq": xavier(keys[0], (input_size, mem_dim)),
        "bq": xavier(keys[1], (1, mem_dim)),
        "Wk": xavier(keys[2], (input_size, mem_dim)),
        "bk": xavier(keys[3], (1, mem_dim)),
        "Wv": xavier(keys[4], (input_size, mem_dim)),
        "bv": xavier(keys[5], (1, mem_dim)),
        "wi": xavier(keys[6], (input_size, 1)),
        "bi": jnp.zeros((1,), jnp.float32),
        "wf": xavier(keys[7], (input_size, 1)),
        "bf": jnp.zeros((1,), jnp.float32),
        "Wo": xavier(keys[8], (input_size, mem_dim)),
        "bo": xavier(keys[9], (1, mem_dim)),
    }


if __name__ == "__main__":
    key = jax.random.PRNGKey(0)

    # (T, B, d, m, row_tile): first case has N divisible by the derived tile,
    # second (N = 135) exercises the clipped partial last block (no padding).
    cases = [(8, 4, 32, 32, None),
             (15, 9, 32, 32, 512)]

    for (T, B, d, m, row_tile) in cases:
        key, k_x, k_c, k_n, k_p = jax.random.split(key, 5)
        x = jax.random.normal(k_x, (T, B, d), jnp.float32)
        C_prev = 0.1 * jax.random.normal(k_c, (T, B, m, m), jnp.float32)
        n_prev = 0.1 * jax.random.normal(k_n, (T, B, m), jnp.float32)
        params = init_params(k_p, d, m)
        w_fused, b_fused = prepare_mlstm_params(params)

        ht, (C, n) = mlstm_pallas(x, C_prev, n_prev, w_fused, b_fused,
                                  row_tile=row_tile)
        jax.block_until_ready((ht, C, n))

        ht_r, (C_r, n_r) = mlstm_ref(x, C_prev, n_prev, params)
        assert ht.shape == (T, B, m) and C.shape == (T, B, m, m) and n.shape == (T, B, m)
        assert jnp.allclose(ht, ht_r, atol=1e-4, rtol=1e-4)
        assert jnp.allclose(C, C_r, atol=1e-4, rtol=1e-4)
        assert jnp.allclose(n, n_r, atol=1e-4, rtol=1e-4)

    print("KERNEL_OK")
</pallas_src>

<mosaic_0001>
module attributes {stable_mosaic.version = 11 : i64} {
  func.func @mlstm_kernel(%arg0: i32, %arg1: memref<8x32xf32, #tpu.memory_space<vmem>>, %arg2: memref<32x256xf32, #tpu.memory_space<vmem>>, %arg3: memref<1x256xf32, #tpu.memory_space<vmem>>, %arg4: memref<8x1024xf32, #tpu.memory_space<vmem>>, %arg5: memref<8x32xf32, #tpu.memory_space<vmem>>, %arg6: memref<8x32xf32, #tpu.memory_space<vmem>>, %arg7: memref<8x1024xf32, #tpu.memory_space<vmem>>, %arg8: memref<8x32xf32, #tpu.memory_space<vmem>>) attributes {dimension_semantics = [#tpu.dimension_semantics<parallel>], iteration_bounds = array<i64: 4>, scalar_prefetch = 0 : i64, scratch_operands = 0 : i64, tpu.core_type = #tpu.core_type<tc>, window_params = [{transform_indices = @transform_0, window_bounds = array<i64: 8, 32>}, {pipeline_mode = #tpu.pipeline_mode<synchronous>, transform_indices = @transform_1, window_bounds = array<i64: 32, 256>}, {pipeline_mode = #tpu.pipeline_mode<synchronous>, transform_indices = @transform_2, window_bounds = array<i64: 1, 256>}, {transform_indices = @transform_3, window_bounds = array<i64: 8, 1024>}, {transform_indices = @transform_4, window_bounds = array<i64: 8, 32>}, {transform_indices = @transform_5, window_bounds = array<i64: 8, 32>}, {transform_indices = @transform_6, window_bounds = array<i64: 8, 1024>}, {transform_indices = @transform_7, window_bounds = array<i64: 8, 32>}]} {
    %c0 = arith.constant 0 : index
    %c0_0 = arith.constant 0 : index
    %0 = vector.load %arg1[%c0, %c0_0] : memref<8x32xf32, #tpu.memory_space<vmem>>, vector<8x32xf32>
    %c0_1 = arith.constant 0 : index
    %c0_2 = arith.constant 0 : index
    %1 = vector.load %arg2[%c0_1, %c0_2] : memref<32x256xf32, #tpu.memory_space<vmem>>, vector<32x256xf32>
    %cst = arith.constant dense<0.000000e+00> : vector<8x256xf32>
    %2 = tpu.matmul %0, %1, %cst {dimension_numbers = #tpu.dot_dimension_numbers<[1], [0], [0], [1], [0, 0, 1, 1], [], []>} : vector<8x32xf32>, vector<32x256xf32>, vector<8x256xf32> -> vector<8x256xf32>
    %c0_3 = arith.constant 0 : index
    %c0_4 = arith.constant 0 : index
    %3 = vector.load %arg3[%c0_3, %c0_4] : memref<1x256xf32, #tpu.memory_space<vmem>>, vector<1x256xf32>
    %4 = vector.broadcast %3 : vector<1x256xf32> to vector<8x256xf32>
    %5 = arith.addf %2, %4 : vector<8x256xf32>
    %6 = vector.extract_strided_slice %5 {offsets = [0, 0], sizes = [8, 32], strides = [1, 1]} : vector<8x256xf32> to vector<8x32xf32>
    %7 = vector.extract_strided_slice %5 {offsets = [0, 32], sizes = [8, 32], strides = [1, 1]} : vector<8x256xf32> to vector<8x32xf32>
    %8 = vector.extract_strided_slice %5 {offsets = [0, 64], sizes = [8, 32], strides = [1, 1]} : vector<8x256xf32> to vector<8x32xf32>
    %9 = vector.extract_strided_slice %5 {offsets = [0, 96], sizes = [8, 32], strides = [1, 1]} : vector<8x256xf32> to vector<8x32xf32>
    %10 = arith.negf %9 : vector<8x32xf32>
    %11 = math.exp %10 : vector<8x32xf32>
    %cst_5 = arith.constant 1.000000e+00 : f32
    %12 = vector.broadcast %cst_5 : f32 to vector<8x32xf32>
    %13 = arith.addf %12, %11 : vector<8x32xf32>
    %14 = arith.divf %12, %13 : vector<8x32xf32>
    %15 = vector.extract_strided_slice %5 {offsets = [0, 128], sizes = [8, 1], strides = [1, 1]} : vector<8x256xf32> to vector<8x1xf32>
    %16 = math.exp %15 : vector<8x1xf32>
    %17 = vector.extract_strided_slice %5 {offsets = [0, 129], sizes = [8, 1], strides = [1, 1]} : vector<8x256xf32> to vector<8x1xf32>
    %18 = arith.negf %17 : vector<8x1xf32>
    %19 = math.exp %18 : vector<8x1xf32>
    %cst_6 = arith.constant 1.000000e+00 : f32
    %20 = vector.broadcast %cst_6 : f32 to vector<8x1xf32>
    %21 = arith.addf %20, %19 : vector<8x1xf32>
    %22 = arith.divf %20, %21 : vector<8x1xf32>
    %23 = vector.broadcast %16 : vector<8x1xf32> to vector<8x32xf32>
    %24 = arith.mulf %23, %8 : vector<8x32xf32>
    %c0_7 = arith.constant 0 : index
    %c0_8 = arith.constant 0 : index
    %25 = vector.load %arg4[%c0_7, %c0_8] : memref<8x1024xf32, #tpu.memory_space<vmem>>, vector<8x1024xf32>
    %26 = vector.extract_strided_slice %25 {offsets = [0, 0], sizes = [8, 32], strides = [1, 1]} : vector<8x1024xf32> to vector<8x32xf32>
    %27 = vector.broadcast %22 : vector<8x1xf32> to vector<8x32xf32>
    %28 = arith.mulf %27, %26 : vector<8x32xf32>
    %29 = vector.extract_strided_slice %24 {offsets = [0, 0], sizes = [8, 1], strides = [1, 1]} : vector<8x32xf32> to vector<8x1xf32>
    %30 = vector.broadcast %29 : vector<8x1xf32> to vector<8x32xf32>
    %31 = arith.mulf %30, %7 : vector<8x32xf32>
    %32 = arith.addf %28, %31 : vector<8x32xf32>
    %33 = arith.mulf %32, %6 : vector<8x32xf32>
    %cst_9 = arith.constant dense<0.000000e+00> : vector<8xf32>
    %34 = vector.multi_reduction <add>, %33, %cst_9 [1] : vector<8x32xf32> to vector<8xf32>
    %35 = vector.shape_cast %34 : vector<8xf32> to vector<8x1xf32>
    %36 = vector.extract_strided_slice %25 {offsets = [0, 32], sizes = [8, 32], strides = [1, 1]} : vector<8x1024xf32> to vector<8x32xf32>
    %37 = vector.broadcast %22 : vector<8x1xf32> to vector<8x32xf32>
    %38 = arith.mulf %37, %36 : vector<8x32xf32>
    %39 = vector.extract_strided_slice %24 {offsets = [0, 1], sizes = [8, 1], strides = [1, 1]} : vector<8x32xf32> to vector<8x1xf32>
    %40 = vector.broadcast %39 : vector<8x1xf32> to vector<8x32xf32>
    %41 = arith.mulf %40, %7 : vector<8x32xf32>
    %42 = arith.addf %38, %41 : vector<8x32xf32>
    %43 = arith.mulf %42, %6 : vector<8x32xf32>
    %cst_10 = arith.constant dense<0.000000e+00> : vector<8xf32>
    %44 = vector.multi_reduction <add>, %43, %cst_10 [1] : vector<8x32xf32> to vector<8xf32>
    %45 = vector.shape_cast %44 : vector<8xf32> to vector<8x1xf32>
    %46 = vector.extract_strided_slice %25 {offsets = [0, 64], sizes = [8, 32], strides = [1, 1]} : vector<8x1024xf32> to vector<8x32xf32>
    %47 = vector.broadcast %22 : vector<8x1xf32> to vector<8x32xf32>
    %48 = arith.mulf %47, %46 : vector<8x32xf32>
    %49 = vector.extract_strided_slice %24 {offsets = [0, 2], sizes = [8, 1], strides = [1, 1]} : vector<8x32xf32> to vector<8x1xf32>
    %50 = vector.broadcast %49 : vector<8x1xf32> to vector<8x32xf32>
    %51 = arith.mulf %50, %7 : vector<8x32xf32>
    %52 = arith.addf %48, %51 : vector<8x32xf32>
    %53 = arith.mulf %52, %6 : vector<8x32xf32>
    %cst_11 = arith.constant dense<0.000000e+00> : vector<8xf32>
    %54 = vector.multi_reduction <add>, %53, %cst_11 [1] : vector<8x32xf32> to vector<8xf32>
    %55 = vector.shape_cast %54 : vector<8xf32> to vector<8x1xf32>
    %56 = vector.extract_strided_slice %25 {offsets = [0, 96], sizes = [8, 32], strides = [1, 1]} : vector<8x1024xf32> to vector<8x32xf32>
    %57 = vector.broadcast %22 : vector<8x1xf32> to vector<8x32xf32>
    %58 = arith.mulf %57, %56 : vector<8x32xf32>
    %59 = vector.extract_strided_slice %24 {offsets = [0, 3], sizes = [8, 1], strides = [1, 1]} : vector<8x32xf32> to vector<8x1xf32>
    %60 = vector.broadcast %59 : vector<8x1xf32> to vector<8x32xf32>
    %61 = arith.mulf %60, %7 : vector<8x32xf32>
    %62 = arith.addf %58, %61 : vector<8x32xf32>
    %63 = arith.mulf %62, %6 : vector<8x32xf32>
    %cst_12 = arith.constant dense<0.000000e+00> : vector<8xf32>
    %64 = vector.multi_reduction <add>, %63, %cst_12 [1] : vector<8x32xf32> to vector<8xf32>
    %65 = vector.shape_cast %64 : vector<8xf32> to vector<8x1xf32>
    %66 = vector.extract_strided_slice %25 {offsets = [0, 128], sizes = [8, 32], strides = [1, 1]} : vector<8x1024xf32> to vector<8x32xf32>
    %67 = vector.broadcast %22 : vector<8x1xf32> to vector<8x32xf32>
    %68 = arith.mulf %67, %66 : vector<8x32xf32>
    %69 = vector.extract_strided_slice %24 {offsets = [0, 4], sizes = [8, 1], strides = [1, 1]} : vector<8x32xf32> to vector<8x1xf32>
    %70 = vector.broadcast %69 : vector<8x1xf32> to vector<8x32xf32>
    %71 = arith.mulf %70, %7 : vector<8x32xf32>
    %72 = arith.addf %68, %71 : vector<8x32xf32>
    %73 = arith.mulf %72, %6 : vector<8x32xf32>
    %cst_13 = arith.constant dense<0.000000e+00> : vector<8xf32>
    %74 = vector.multi_reduction <add>, %73, %cst_13 [1] : vector<8x32xf32> to vector<8xf32>
    %75 = vector.shape_cast %74 : vector<8xf32> to vector<8x1xf32>
    %76 = vector.extract_strided_slice %25 {offsets = [0, 160], sizes = [8, 32], strides = [1, 1]} : vector<8x1024xf32> to vector<8x32xf32>
    %77 = vector.broadcast %22 : vector<8x1xf32> to vector<8x32xf32>
    %78 = arith.mulf %77, %76 : vector<8x32xf32>
    %79 = vector.extract_strided_slice %24 {offsets = [0, 5], sizes = [8, 1], strides = [1, 1]} : vector<8x32xf32> to vector<8x1xf32>
    %80 = vector.broadcast %79 : vector<8x1xf32> to vector<8x32xf32>
    %81 = arith.mulf %80, %7 : vector<8x32xf32>
    %82 = arith.addf %78, %81 : vector<8x32xf32>
    %83 = arith.mulf %82, %6 : vector<8x32xf32>
    %cst_14 = arith.constant dense<0.000000e+00> : vector<8xf32>
    %84 = vector.multi_reduction <add>, %83, %cst_14 [1] : vector<8x32xf32> to vector<8xf32>
    %85 = vector.shape_cast %84 : vector<8xf32> to vector<8x1xf32>
    %86 = vector.extract_strided_slice %25 {offsets = [0, 192], sizes = [8, 32], strides = [1, 1]} : vector<8x1024xf32> to vector<8x32xf32>
    %87 = vector.broadcast %22 : vector<8x1xf32> to vector<8x32xf32>
    %88 = arith.mulf %87, %86 : vector<8x32xf32>
    %89 = vector.extract_strided_slice %24 {offsets = [0, 6], sizes = [8, 1], strides = [1, 1]} : vector<8x32xf32> to vector<8x1xf32>
    %90 = vector.broadcast %89 : vector<8x1xf32> to vector<8x32xf32>
    %91 = arith.mulf %90, %7 : vector<8x32xf32>
    %92 = arith.addf %88, %91 : vector<8x32xf32>
    %93 = arith.mulf %92, %6 : vector<8x32xf32>
    %cst_15 = arith.constant dense<0.000000e+00> : vector<8xf32>
    %94 = vector.multi_reduction <add>, %93, %cst_15 [1] : vector<8x32xf32> to vector<8xf32>
    %95 = vector.shape_cast %94 : vector<8xf32> to vector<8x1xf32>
    %96 = vector.extract_strided_slice %25 {offsets = [0, 224], sizes = [8, 32], strides = [1, 1]} : vector<8x1024xf32> to vector<8x32xf32>
    %97 = vector.broadcast %22 : vector<8x1xf32> to vector<8x32xf32>
    %98 = arith.mulf %97, %96 : vector<8x32xf32>
    %99 = vector.extract_strided_slice %24 {offsets = [0, 7], sizes = [8, 1], strides = [1, 1]} : vector<8x32xf32> to vector<8x1xf32>
    %100 = vector.broadcast %99 : vector<8x1xf32> to vector<8x32xf32>
    %101 = arith.mulf %100, %7 : vector<8x32xf32>
    %102 = arith.addf %98, %101 : vector<8x32xf32>
    %103 = arith.mulf %102, %6 : vector<8x32xf32>
    %cst_16 = arith.constant dense<0.000000e+00> : vector<8xf32>
    %104 = vector.multi_reduction <add>, %103, %cst_16 [1] : vector<8x32xf32> to vector<8xf32>
    %105 = vector.shape_cast %104 : vector<8xf32> to vector<8x1xf32>
    %106 = vector.extract_strided_slice %25 {offsets = [0, 256], sizes = [8, 32], strides = [1, 1]} : vector<8x1024xf32> to vector<8x32xf32>
    %107 = vector.broadcast %22 : vector<8x1xf32> to vector<8x32xf32>
    %108 = arith.mulf %107, %106 : vector<8x32xf32>
    %109 = vector.extract_strided_slice %24 {offsets = [0, 8], sizes = [8, 1], strides = [1, 1]} : vector<8x32xf32> to vector<8x1xf32>
    %110 = vector.broadcast %109 : vector<8x1xf32> to vector<8x32xf32>
    %111 = arith.mulf %110, %7 : vector<8x32xf32>
    %112 = arith.addf %108, %111 : vector<8x32xf32>
    %113 = arith.mulf %112, %6 : vector<8x32xf32>
    %cst_17 = arith.constant dense<0.000000e+00> : vector<8xf32>
    %114 = vector.multi_reduction <add>, %113, %cst_17 [1] : vector<8x32xf32> to vector<8xf32>
    %115 = vector.shape_cast %114 : vector<8xf32> to vector<8x1xf32>
    %116 = vector.extract_strided_slice %25 {offsets = [0, 288], sizes = [8, 32], strides = [1, 1]} : vector<8x1024xf32> to vector<8x32xf32>
    %117 = vector.broadcast %22 : vector<8x1xf32> to vector<8x32xf32>
    %118 = arith.mulf %117, %116 : vector<8x32xf32>
    %119 = vector.extract_strided_slice %24 {offsets = [0, 9], sizes = [8, 1], strides = [1, 1]} : vector<8x32xf32> to vector<8x1xf32>
    %120 = vector.broadcast %119 : vector<8x1xf32> to vector<8x32xf32>
    %121 = arith.mulf %120, %7 : vector<8x32xf32>
    %122 = arith.addf %118, %121 : vector<8x32xf32>
    %123 = arith.mulf %122, %6 : vector<8x32xf32>
    %cst_18 = arith.constant dense<0.000000e+00> : vector<8xf32>
    %124 = vector.multi_reduction <add>, %123, %cst_18 [1] : vector<8x32xf32> to vector<8xf32>
    %125 = vector.shape_cast %124 : vector<8xf32> to vector<8x1xf32>
    %126 = vector.extract_strided_slice %25 {offsets = [0, 320], sizes = [8, 32], strides = [1, 1]} : vector<8x1024xf32> to vector<8x32xf32>
    %127 = vector.broadcast %22 : vector<8x1xf32> to vector<8x32xf32>
    %128 = arith.mulf %127, %126 : vector<8x32xf32>
    %129 = vector.extract_strided_slice %24 {offsets = [0, 10], sizes = [8, 1], strides = [1, 1]} : vector<8x32xf32> to vector<8x1xf32>
    %130 = vector.broadcast %129 : vector<8x1xf32> to vector<8x32xf32>
    %131 = arith.mulf %130, %7 : vector<8x32xf32>
    %132 = arith.addf %128, %131 : vector<8x32xf32>
    %133 = arith.mulf %132, %6 : vector<8x32xf32>
    %cst_19 = arith.constant dense<0.000000e+00> : vector<8xf32>
    %134 = vector.multi_reduction <add>, %133, %cst_19 [1] : vector<8x32xf32> to vector<8xf32>
    %135 = vector.shape_cast %134 : vector<8xf32> to vector<8x1xf32>
    %136 = vector.extract_strided_slice %25 {offsets = [0, 352], sizes = [8, 32], strides = [1, 1]} : vector<8x1024xf32> to vector<8x32xf32>
    %137 = vector.broadcast %22 : vector<8x1xf32> to vector<8x32xf32>
    %138 = arith.mulf %137, %136 : vector<8x32xf32>
    %139 = vector.extract_strided_slice %24 {offsets = [0, 11], sizes = [8, 1], strides = [1, 1]} : vector<8x32xf32> to vector<8x1xf32>
    %140 = vector.broadcast %139 : vector<8x1xf32> to vector<8x32xf32>
    %141 = arith.mulf %140, %7 : vector<8x32xf32>
    %142 = arith.addf %138, %141 : vector<8x32xf32>
    %143 = arith.mulf %142, %6 : vector<8x32xf32>
    %cst_20 = arith.constant dense<0.000000e+00> : vector<8xf32>
    %144 = vector.multi_reduction <add>, %143, %cst_20 [1] : vector<8x32xf32> to vector<8xf32>
    %145 = vector.shape_cast %144 : vector<8xf32> to vector<8x1xf32>
    %146 = vector.extract_strided_slice %25 {offsets = [0, 384], sizes = [8, 32], strides = [1, 1]} : vector<8x1024xf32> to vector<8x32xf32>
    %147 = vector.broadcast %22 : vector<8x1xf32> to vector<8x32xf32>
    %148 = arith.mulf %147, %146 : vector<8x32xf32>
    %149 = vector.extract_strided_slice %24 {offsets = [0, 12], sizes = [8, 1], strides = [1, 1]} : vector<8x32xf32> to vector<8x1xf32>
    %150 = vector.broadcast %149 : vector<8x1xf32> to vector<8x32xf32>
    %151 = arith.mulf %150, %7 : vector<8x32xf32>
    %152 = arith.addf %148, %151 : vector<8x32xf32>
    %153 = arith.mulf %152, %6 : vector<8x32xf32>
    %cst_21 = arith.constant dense<0.000000e+00> : vector<8xf32>
    %154 = vector.multi_reduction <add>, %153, %cst_21 [1] : vector<8x32xf32> to vector<8xf32>
    %155 = vector.shape_cast %154 : vector<8xf32> to vector<8x1xf32>
    %156 = vector.extract_strided_slice %25 {offsets = [0, 416], sizes = [8, 32], strides = [1, 1]} : vector<8x1024xf32> to vector<8x32xf32>
    %157 = vector.broadcast %22 : vector<8x1xf32> to vector<8x32xf32>
    %158 = arith.mulf %157, %156 : vector<8x32xf32>
    %159 = vector.extract_strided_slice %24 {offsets = [0, 13], sizes = [8, 1], strides = [1, 1]} : vector<8x32xf32> to vector<8x1xf32>
    %160 = vector.broadcast %159 : vector<8x1xf32> to vector<8x32xf32>
    %161 = arith.mulf %160, %7 : vector<8x32xf32>
    %162 = arith.addf %158, %161 : vector<8x32xf32>
    %163 = arith.mulf %162, %6 : vector<8x32xf32>
    %cst_22 = arith.constant dense<0.000000e+00> : vector<8xf32>
    %164 = vector.multi_reduction <add>, %163, %cst_22 [1] : vector<8x32xf32> to vector<8xf32>
    %165 = vector.shape_cast %164 : vector<8xf32> to vector<8x1xf32>
    %166 = vector.extract_strided_slice %25 {offsets = [0, 448], sizes = [8, 32], strides = [1, 1]} : vector<8x1024xf32> to vector<8x32xf32>
    %167 = vector.broadcast %22 : vector<8x1xf32> to vector<8x32xf32>
    %168 = arith.mulf %167, %166 : vector<8x32xf32>
    %169 = vector.extract_strided_slice %24 {offsets = [0, 14], sizes = [8, 1], strides = [1, 1]} : vector<8x32xf32> to vector<8x1xf32>
    %170 = vector.broadcast %169 : vector<8x1xf32> to vector<8x32xf32>
    %171 = arith.mulf %170, %7 : vector<8x32xf32>
    %172 = arith.addf %168, %171 : vector<8x32xf32>
    %173 = arith.mulf %172, %6 : vector<8x32xf32>
    %cst_23 = arith.constant dense<0.000000e+00> : vector<8xf32>
    %174 = vector.multi_reduction <add>, %173, %cst_23 [1] : vector<8x32xf32> to vector<8xf32>
    %175 = vector.shape_cast %174 : vector<8xf32> to vector<8x1xf32>
    %176 = vector.extract_strided_slice %25 {offsets = [0, 480], sizes = [8, 32], strides = [1, 1]} : vector<8x1024xf32> to vector<8x32xf32>
    %177 = vector.broadcast %22 : vector<8x1xf32> to vector<8x32xf32>
    %178 = arith.mulf %177, %176 : vector<8x32xf32>
    %179 = vector.extract_strided_slice %24 {offsets = [0, 15], sizes = [8, 1], strides = [1, 1]} : vector<8x32xf32> to vector<8x1xf32>
    %180 = vector.broadcast %179 : vector<8x1xf32> to vector<8x32xf32>
    %181 = arith.mulf %180, %7 : vector<8x32xf32>
    %182 = arith.addf %178, %181 : vector<8x32xf32>
    %183 = arith.mulf %182, %6 : vector<8x32xf32>
    %cst_24 = arith.constant dense<0.000000e+00> : vector<8xf32>
    %184 = vector.multi_reduction <add>, %183, %cst_24 [1] : vector<8x32xf32> to vector<8xf32>
    %185 = vector.shape_cast %184 : vector<8xf32> to vector<8x1xf32>
    %186 = vector.extract_strided_slice %25 {offsets = [0, 512], sizes = [8, 32], strides = [1, 1]} : vector<8x1024xf32> to vector<8x32xf32>
    %187 = vector.broadcast %22 : vector<8x1xf32> to vector<8x32xf32>
    %188 = arith.mulf %187, %186 : vector<8x32xf32>
    %189 = vector.extract_strided_slice %24 {offsets = [0, 16], sizes = [8, 1], strides = [1, 1]} : vector<8x32xf32> to vector<8x1xf32>
    %190 = vector.broadcast %189 : vector<8x1xf32> to vector<8x32xf32>
    %191 = arith.mulf %190, %7 : vector<8x32xf32>
    %192 = arith.addf %188, %191 : vector<8x32xf32>
    %193 = arith.mulf %192, %6 : vector<8x32xf32>
    %cst_25 = arith.constant dense<0.000000e+00> : vector<8xf32>
    %194 = vector.multi_reduction <add>, %193, %cst_25 [1] : vector<8x32xf32> to vector<8xf32>
    %195 = vector.shape_cast %194 : vector<8xf32> to vector<8x1xf32>
    %196 = vector.extract_strided_slice %25 {offsets = [0, 544], sizes = [8, 32], strides = [1, 1]} : vector<8x1024xf32> to vector<8x32xf32>
    %197 = vector.broadcast %22 : vector<8x1xf32> to vector<8x32xf32>
    %198 = arith.mulf %197, %196 : vector<8x32xf32>
    %199 = vector.extract_strided_slice %24 {offsets = [0, 17], sizes = [8, 1], strides = [1, 1]} : vector<8x32xf32> to vector<8x1xf32>
    %200 = vector.broadcast %199 : vector<8x1xf32> to vector<8x32xf32>
    %201 = arith.mulf %200, %7 : vector<8x32xf32>
    %202 = arith.addf %198, %201 : vector<8x32xf32>
    %203 = arith.mulf %202, %6 : vector<8x32xf32>
    %cst_26 = arith.constant dense<0.000000e+00> : vector<8xf32>
    %204 = vector.multi_reduction <add>, %203, %cst_26 [1] : vector<8x32xf32> to vector<8xf32>
    %205 = vector.shape_cast %204 : vector<8xf32> to vector<8x1xf32>
    %206 = vector.extract_strided_slice %25 {offsets = [0, 576], sizes = [8, 32], strides = [1, 1]} : vector<8x1024xf32> to vector<8x32xf32>
    %207 = vector.broadcast %22 : vector<8x1xf32> to vector<8x32xf32>
    %208 = arith.mulf %207, %206 : vector<8x32xf32>
    %209 = vector.extract_strided_slice %24 {offsets = [0, 18], sizes = [8, 1], strides = [1, 1]} : vector<8x32xf32> to vector<8x1xf32>
    %210 = vector.broadcast %209 : vector<8x1xf32> to vector<8x32xf32>
    %211 = arith.mulf %210, %7 : vector<8x32xf32>
    %212 = arith.addf %208, %211 : vector<8x32xf32>
    %213 = arith.mulf %212, %6 : vector<8x32xf32>
    %cst_27 = arith.constant dense<0.000000e+00> : vector<8xf32>
    %214 = vector.multi_reduction <add>, %213, %cst_27 [1] : vector<8x32xf32> to vector<8xf32>
    %215 = vector.shape_cast %214 : vector<8xf32> to vector<8x1xf32>
    %216 = vector.extract_strided_slice %25 {offsets = [0, 608], sizes = [8, 32], strides = [1, 1]} : vector<8x1024xf32> to vector<8x32xf32>
    %217 = vector.broadcast %22 : vector<8x1xf32> to vector<8x32xf32>
    %218 = arith.mulf %217, %216 : vector<8x32xf32>
    %219 = vector.extract_strided_slice %24 {offsets = [0, 19], sizes = [8, 1], strides = [1, 1]} : vector<8x32xf32> to vector<8x1xf32>
    %220 = vector.broadcast %219 : vector<8x1xf32> to vector<8x32xf32>
    %221 = arith.mulf %220, %7 : vector<8x32xf32>
    %222 = arith.addf %218, %221 : vector<8x32xf32>
    %223 = arith.mulf %222, %6 : vector<8x32xf32>
    %cst_28 = arith.constant dense<0.000000e+00> : vector<8xf32>
    %224 = vector.multi_reduction <add>, %223, %cst_28 [1] : vector<8x32xf32> to vector<8xf32>
    %225 = vector.shape_cast %224 : vector<8xf32> to vector<8x1xf32>
    %226 = vector.extract_strided_slice %25 {offsets = [0, 640], sizes = [8, 32], strides = [1, 1]} : vector<8x1024xf32> to vector<8x32xf32>
    %227 = vector.broadcast %22 : vector<8x1xf32> to vector<8x32xf32>
    %228 = arith.mulf %227, %226 : vector<8x32xf32>
    %229 = vector.extract_strided_slice %24 {offsets = [0, 20], sizes = [8, 1], strides = [1, 1]} : vector<8x32xf32> to vector<8x1xf32>
    %230 = vector.broadcast %229 : vector<8x1xf32> to vector<8x32xf32>
    %231 = arith.mulf %230, %7 : vector<8x32xf32>
    %232 = arith.addf %228, %231 : vector<8x32xf32>
    %233 = arith.mulf %232, %6 : vector<8x32xf32>
    %cst_29 = arith.constant dense<0.000000e+00> : vector<8xf32>
    %234 = vector.multi_reduction <add>, %233, %cst_29 [1] : vector<8x32xf32> to vector<8xf32>
    %235 = vector.shape_cast %234 : vector<8xf32> to vector<8x1xf32>
    %236 = vector.extract_strided_slice %25 {offsets = [0, 672], sizes = [8, 32], strides = [1, 1]} : vector<8x1024xf32> to vector<8x32xf32>
    %237 = vector.broadcast %22 : vector<8x1xf32> to vector<8x32xf32>
    %238 = arith.mulf %237, %236 : vector<8x32xf32>
    %239 = vector.extract_strided_slice %24 {offsets = [0, 21], sizes = [8, 1], strides = [1, 1]} : vector<8x32xf32> to vector<8x1xf32>
    %240 = vector.broadcast %239 : vector<8x1xf32> to vector<8x32xf32>
    %241 = arith.mulf %240, %7 : vector<8x32xf32>
    %242 = arith.addf %238, %241 : vector<8x32xf32>
    %243 = arith.mulf %242, %6 : vector<8x32xf32>
    %cst_30 = arith.constant dense<0.000000e+00> : vector<8xf32>
    %244 = vector.multi_reduction <add>, %243, %cst_30 [1] : vector<8x32xf32> to vector<8xf32>
    %245 = vector.shape_cast %244 : vector<8xf32> to vector<8x1xf32>
    %246 = vector.extract_strided_slice %25 {offsets = [0, 704], sizes = [8, 32], strides = [1, 1]} : vector<8x1024xf32> to vector<8x32xf32>
    %247 = vector.broadcast %22 : vector<8x1xf32> to vector<8x32xf32>
    %248 = arith.mulf %247, %246 : vector<8x32xf32>
    %249 = vector.extract_strided_slice %24 {offsets = [0, 22], sizes = [8, 1], strides = [1, 1]} : vector<8x32xf32> to vector<8x1xf32>
    %250 = vector.broadcast %249 : vector<8x1xf32> to vector<8x32xf32>
    %251 = arith.mulf %250, %7 : vector<8x32xf32>
    %252 = arith.addf %248, %251 : vector<8x32xf32>
    %253 = arith.mulf %252, %6 : vector<8x32xf32>
    %cst_31 = arith.constant dense<0.000000e+00> : vector<8xf32>
    %254 = vector.multi_reduction <add>, %253, %cst_31 [1] : vector<8x32xf32> to vector<8xf32>
    %255 = vector.shape_cast %254 : vector<8xf32> to vector<8x1xf32>
    %256 = vector.extract_strided_slice %25 {offsets = [0, 736], sizes = [8, 32], strides = [1, 1]} : vector<8x1024xf32> to vector<8x32xf32>
    %257 = vector.broadcast %22 : vector<8x1xf32> to vector<8x32xf32>
    %258 = arith.mulf %257, %256 : vector<8x32xf32>
    %259 = vector.extract_strided_slice %24 {offsets = [0, 23], sizes = [8, 1], strides = [1, 1]} : vector<8x32xf32> to vector<8x1xf32>
    %260 = vector.broadcast %259 : vector<8x1xf32> to vector<8x32xf32>
    %261 = arith.mulf %260, %7 : vector<8x32xf32>
    %262 = arith.addf %258, %261 : vector<8x32xf32>
    %263 = arith.mulf %262, %6 : vector<8x32xf32>
    %cst_32 = arith.constant dense<0.000000e+00> : vector<8xf32>
    %264 = vector.multi_reduction <add>, %263, %cst_32 [1] : vector<8x32xf32> to vector<8xf32>
    %265 = vector.shape_cast %264 : vector<8xf32> to vector<8x1xf32>
    %266 = vector.extract_strided_slice %25 {offsets = [0, 768], sizes = [8, 32], strides = [1, 1]} : vector<8x1024xf32> to vector<8x32xf32>
    %267 = vector.broadcast %22 : vector<8x1xf32> to vector<8x32xf32>
    %268 = arith.mulf %267, %266 : vector<8x32xf32>
    %269 = vector.extract_strided_slice %24 {offsets = [0, 24], sizes = [8, 1], strides = [1, 1]} : vector<8x32xf32> to vector<8x1xf32>
    %270 = vector.broadcast %269 : vector<8x1xf32> to vector<8x32xf32>
    %271 = arith.mulf %270, %7 : vector<8x32xf32>
    %272 = arith.addf %268, %271 : vector<8x32xf32>
    %273 = arith.mulf %272, %6 : vector<8x32xf32>
    %cst_33 = arith.constant dense<0.000000e+00> : vector<8xf32>
    %274 = vector.multi_reduction <add>, %273, %cst_33 [1] : vector<8x32xf32> to vector<8xf32>
    %275 = vector.shape_cast %274 : vector<8xf32> to vector<8x1xf32>
    %276 = vector.extract_strided_slice %25 {offsets = [0, 800], sizes = [8, 32], strides = [1, 1]} : vector<8x1024xf32> to vector<8x32xf32>
    %277 = vector.broadcast %22 : vector<8x1xf32> to vector<8x32xf32>
    %278 = arith.mulf %277, %276 : vector<8x32xf32>
    %279 = vector.extract_strided_slice %24 {offsets = [0, 25], sizes = [8, 1], strides = [1, 1]} : vector<8x32xf32> to vector<8x1xf32>
    %280 = vector.broadcast %279 : vector<8x1xf32> to vector<8x32xf32>
    %281 = arith.mulf %280, %7 : vector<8x32xf32>
    %282 = arith.addf %278, %281 : vector<8x32xf32>
    %283 = arith.mulf %282, %6 : vector<8x32xf32>
    %cst_34 = arith.constant dense<0.000000e+00> : vector<8xf32>
    %284 = vector.multi_reduction <add>, %283, %cst_34 [1] : vector<8x32xf32> to vector<8xf32>
    %285 = vector.shape_cast %284 : vector<8xf32> to vector<8x1xf32>
    %286 = vector.extract_strided_slice %25 {offsets = [0, 832], sizes = [8, 32], strides = [1, 1]} : vector<8x1024xf32> to vector<8x32xf32>
    %287 = vector.broadcast %22 : vector<8x1xf32> to vector<8x32xf32>
    %288 = arith.mulf %287, %286 : vector<8x32xf32>
    %289 = vector.extract_strided_slice %24 {offsets = [0, 26], sizes = [8, 1], strides = [1, 1]} : vector<8x32xf32> to vector<8x1xf32>
    %290 = vector.broadcast %289 : vector<8x1xf32> to vector<8x32xf32>
    %291 = arith.mulf %290, %7 : vector<8x32xf32>
    %292 = arith.addf %288, %291 : vector<8x32xf32>
    %293 = arith.mulf %292, %6 : vector<8x32xf32>
    %cst_35 = arith.constant dense<0.000000e+00> : vector<8xf32>
    %294 = vector.multi_reduction <add>, %293, %cst_35 [1] : vector<8x32xf32> to vector<8xf32>
    %295 = vector.shape_cast %294 : vector<8xf32> to vector<8x1xf32>
    %296 = vector.extract_strided_slice %25 {offsets = [0, 864], sizes = [8, 32], strides = [1, 1]} : vector<8x1024xf32> to vector<8x32xf32>
    %297 = vector.broadcast %22 : vector<8x1xf32> to vector<8x32xf32>
    %298 = arith.mulf %297, %296 : vector<8x32xf32>
    %299 = vector.extract_strided_slice %24 {offsets = [0, 27], sizes = [8, 1], strides = [1, 1]} : vector<8x32xf32> to vector<8x1xf32>
    %300 = vector.broadcast %299 : vector<8x1xf32> to vector<8x32xf32>
    %301 = arith.mulf %300, %7 : vector<8x32xf32>
    %302 = arith.addf %298, %301 : vector<8x32xf32>
    %303 = arith.mulf %302, %6 : vector<8x32xf32>
    %cst_36 = arith.constant dense<0.000000e+00> : vector<8xf32>
    %304 = vector.multi_reduction <add>, %303, %cst_36 [1] : vector<8x32xf32> to vector<8xf32>
    %305 = vector.shape_cast %304 : vector<8xf32> to vector<8x1xf32>
    %306 = vector.extract_strided_slice %25 {offsets = [0, 896], sizes = [8, 32], strides = [1, 1]} : vector<8x1024xf32> to vector<8x32xf32>
    %307 = vector.broadcast %22 : vector<8x1xf32> to vector<8x32xf32>
    %308 = arith.mulf %307, %306 : vector<8x32xf32>
    %309 = vector.extract_strided_slice %24 {offsets = [0, 28], sizes = [8, 1], strides = [1, 1]} : vector<8x32xf32> to vector<8x1xf32>
    %310 = vector.broadcast %309 : vector<8x1xf32> to vector<8x32xf32>
    %311 = arith.mulf %310, %7 : vector<8x32xf32>
    %312 = arith.addf %308, %311 : vector<8x32xf32>
    %313 = arith.mulf %312, %6 : vector<8x32xf32>
    %cst_37 = arith.constant dense<0.000000e+00> : vector<8xf32>
    %314 = vector.multi_reduction <add>, %313, %cst_37 [1] : vector<8x32xf32> to vector<8xf32>
    %315 = vector.shape_cast %314 : vector<8xf32> to vector<8x1xf32>
    %316 = vector.extract_strided_slice %25 {offsets = [0, 928], sizes = [8, 32], strides = [1, 1]} : vector<8x1024xf32> to vector<8x32xf32>
    %317 = vector.broadcast %22 : vector<8x1xf32> to vector<8x32xf32>
    %318 = arith.mulf %317, %316 : vector<8x32xf32>
    %319 = vector.extract_strided_slice %24 {offsets = [0, 29], sizes = [8, 1], strides = [1, 1]} : vector<8x32xf32> to vector<8x1xf32>
    %320 = vector.broadcast %319 : vector<8x1xf32> to vector<8x32xf32>
    %321 = arith.mulf %320, %7 : vector<8x32xf32>
    %322 = arith.addf %318, %321 : vector<8x32xf32>
    %323 = arith.mulf %322, %6 : vector<8x32xf32>
    %cst_38 = arith.constant dense<0.000000e+00> : vector<8xf32>
    %324 = vector.multi_reduction <add>, %323, %cst_38 [1] : vector<8x32xf32> to vector<8xf32>
    %325 = vector.shape_cast %324 : vector<8xf32> to vector<8x1xf32>
    %326 = vector.extract_strided_slice %25 {offsets = [0, 960], sizes = [8, 32], strides = [1, 1]} : vector<8x1024xf32> to vector<8x32xf32>
    %327 = vector.broadcast %22 : vector<8x1xf32> to vector<8x32xf32>
    %328 = arith.mulf %327, %326 : vector<8x32xf32>
    %329 = vector.extract_strided_slice %24 {offsets = [0, 30], sizes = [8, 1], strides = [1, 1]} : vector<8x32xf32> to vector<8x1xf32>
    %330 = vector.broadcast %329 : vector<8x1xf32> to vector<8x32xf32>
    %331 = arith.mulf %330, %7 : vector<8x32xf32>
    %332 = arith.addf %328, %331 : vector<8x32xf32>
    %333 = arith.mulf %332, %6 : vector<8x32xf32>
    %cst_39 = arith.constant dense<0.000000e+00> : vector<8xf32>
    %334 = vector.multi_reduction <add>, %333, %cst_39 [1] : vector<8x32xf32> to vector<8xf32>
    %335 = vector.shape_cast %334 : vector<8xf32> to vector<8x1xf32>
    %336 = vector.extract_strided_slice %25 {offsets = [0, 992], sizes = [8, 32], strides = [1, 1]} : vector<8x1024xf32> to vector<8x32xf32>
    %337 = vector.broadcast %22 : vector<8x1xf32> to vector<8x32xf32>
    %338 = arith.mulf %337, %336 : vector<8x32xf32>
    %339 = vector.extract_strided_slice %24 {offsets = [0, 31], sizes = [8, 1], strides = [1, 1]} : vector<8x32xf32> to vector<8x1xf32>
    %340 = vector.broadcast %339 : vector<8x1xf32> to vector<8x32xf32>
    %341 = arith.mulf %340, %7 : vector<8x32xf32>
    %342 = arith.addf %338, %341 : vector<8x32xf32>
    %343 = arith.mulf %342, %6 : vector<8x32xf32>
    %cst_40 = arith.constant dense<0.000000e+00> : vector<8xf32>
    %344 = vector.multi_reduction <add>, %343, %cst_40 [1] : vector<8x32xf32> to vector<8xf32>
    %345 = vector.shape_cast %344 : vector<8xf32> to vector<8x1xf32>
    %346 = tpu.concatenate %32, %42, %52, %62, %72, %82, %92, %102, %112, %122, %132, %142, %152, %162, %172, %182 in 1 : vector<8x32xf32>, vector<8x32xf32>, vector<8x32xf32>, vector<8x32xf32>, vector<8x32xf32>, vector<8x32xf32>, vector<8x32xf32>, vector<8x32xf32>, vector<8x32xf32>, vector<8x32xf32>, vector<8x32xf32>, vector<8x32xf32>, vector<8x32xf32>, vector<8x32xf32>, vector<8x32xf32>, vector<8x32xf32> -> vector<8x512xf32>
    %347 = tpu.concatenate %192, %202, %212, %222, %232, %242, %252, %262, %272, %282, %292, %302, %312, %322, %332, %342 in 1 : vector<8x32xf32>, vector<8x32xf32>, vector<8x32xf32>, vector<8x32xf32>, vector<8x32xf32>, vector<8x32xf32>, vector<8x32xf32>, vector<8x32xf32>, vector<8x32xf32>, vector<8x32xf32>, vector<8x32xf32>, vector<8x32xf32>, vector<8x32xf32>, vector<8x32xf32>, vector<8x32xf32>, vector<8x32xf32> -> vector<8x512xf32>
    %348 = tpu.concatenate %346, %347 in 1 : vector<8x512xf32>, vector<8x512xf32> -> vector<8x1024xf32>
    %349 = tpu.concatenate %35, %45, %55, %65, %75, %85, %95, %105, %115, %125, %135, %145, %155, %165, %175, %185 in 1 : vector<8x1xf32>, vector<8x1xf32>, vector<8x1xf32>, vector<8x1xf32>, vector<8x1xf32>, vector<8x1xf32>, vector<8x1xf32>, vector<8x1xf32>, vector<8x1xf32>, vector<8x1xf32>, vector<8x1xf32>, vector<8x1xf32>, vector<8x1xf32>, vector<8x1xf32>, vector<8x1xf32>, vector<8x1xf32> -> vector<8x16xf32>
    %350 = tpu.concatenate %195, %205, %215, %225, %235, %245, %255, %265, %275, %285, %295, %305, %315, %325, %335, %345 in 1 : vector<8x1xf32>, vector<8x1xf32>, vector<8x1xf32>, vector<8x1xf32>, vector<8x1xf32>, vector<8x1xf32>, vector<8x1xf32>, vector<8x1xf32>, vector<8x1xf32>, vector<8x1xf32>, vector<8x1xf32>, vector<8x1xf32>, vector<8x1xf32>, vector<8x1xf32>, vector<8x1xf32>, vector<8x1xf32> -> vector<8x16xf32>
    %351 = tpu.concatenate %349, %350 in 1 : vector<8x16xf32>, vector<8x16xf32> -> vector<8x32xf32>
    %c0_41 = arith.constant 0 : index
    %c0_42 = arith.constant 0 : index
    %352 = vector.load %arg5[%c0_41, %c0_42] : memref<8x32xf32, #tpu.memory_space<vmem>>, vector<8x32xf32>
    %353 = vector.broadcast %22 : vector<8x1xf32> to vector<8x32xf32>
    %354 = arith.mulf %353, %352 : vector<8x32xf32>
    %355 = vector.broadcast %16 : vector<8x1xf32> to vector<8x32xf32>
    %356 = arith.mulf %355, %7 : vector<8x32xf32>
    %357 = arith.addf %354, %356 : vector<8x32xf32>
    %358 = arith.mulf %357, %6 : vector<8x32xf32>
    %cst_43 = arith.constant dense<0.000000e+00> : vector<8xf32>
    %359 = vector.multi_reduction <add>, %358, %cst_43 [1] : vector<8x32xf32> to vector<8xf32>
    %360 = vector.shape_cast %359 : vector<8xf32> to vector<8x1xf32>
    %361 = math.absf %360 : vector<8x1xf32>
    %cst_44 = arith.constant 1.000000e+00 : f32
    %362 = vector.broadcast %cst_44 : f32 to vector<8x1xf32>
    %363 = arith.maximumf %361, %362 : vector<8x1xf32>
    %364 = tpu.reciprocal %363 : vector<8x1xf32> -> vector<8x1xf32>
    %365 = vector.broadcast %364 : vector<8x1xf32> to vector<8x32xf32>
    %366 = arith.mulf %351, %365 : vector<8x32xf32>
    %367 = arith.mulf %14, %366 : vector<8x32xf32>
    %c0_45 = arith.constant 0 : index
    %c0_46 = arith.constant 0 : index
    %368 = vector.load %arg6[%c0_45, %c0_46] : memref<8x32xf32, #tpu.memory_space<vmem>>, vector<8x32xf32>
    tpu.vector_store %arg6[%c0_45, %c0_46], %367 {strides = array<i32>} : memref<8x32xf32, #tpu.memory_space<vmem>>, vector<8x32xf32>,
    %c0_47 = arith.constant 0 : index
    %c0_48 = arith.constant 0 : index
    %369 = vector.load %arg7[%c0_47, %c0_48] : memref<8x1024xf32, #tpu.memory_space<vmem>>, vector<8x1024xf32>
    tpu.vector_store %arg7[%c0_47, %c0_48], %348 {strides = array<i32>} : memref<8x1024xf32, #tpu.memory_space<vmem>>, vector<8x1024xf32>,
    %c0_49 = arith.constant 0 : index
    %c0_50 = arith.constant 0 : index
    %370 = vector.load %arg8[%c0_49, %c0_50] : memref<8x32xf32, #tpu.memory_space<vmem>>, vector<8x32xf32>
    tpu.vector_store %arg8[%c0_49, %c0_50], %357 {strides = array<i32>} : memref<8x32xf32, #tpu.memory_space<vmem>>, vector<8x32xf32>,
    return
  }
  func.func @transform_0(%arg0: i32) -> (i32, i32) {
    %c0_i32 = arith.constant 0 : i32
    %c0_i32_0 = arith.constant 0 : i32
    return %arg0, %c0_i32 : i32, i32
  }
  func.func @transform_1(%arg0: i32) -> (i32, i32) {
    %c0_i32 = arith.constant 0 : i32
    %c0_i32_0 = arith.constant 0 : i32
    %c0_i32_1 = arith.constant 0 : i32
    return %c0_i32, %c0_i32_0 : i32, i32
  }
  func.func @transform_2(%arg0: i32) -> (i32, i32) {
    %c0_i32 = arith.constant 0 : i32
    %c0_i32_0 = arith.constant 0 : i32
    %c0_i32_1 = arith.constant 0 : i32
    return %c0_i32, %c0_i32_0 : i32, i32
  }
  func.func @transform_3(%arg0: i32) -> (i32, i32) {
    %c0_i32 = arith.constant 0 : i32
    %c0_i32_0 = arith.constant 0 : i32
    return %arg0, %c0_i32 : i32, i32
  }
  func.func @transform_4(%arg0: i32) -> (i32, i32) {
    %c0_i32 = arith.constant 0 : i32
    %c0_i32_0 = arith.constant 0 : i32
    return %arg0, %c0_i32 : i32, i32
  }
  func.func @transform_5(%arg0: i32) -> (i32, i32) {
    %c0_i32 = arith.constant 0 : i32
    %c0_i32_0 = arith.constant 0 : i32
    return %arg0, %c0_i32 : i32, i32
  }
  func.func @transform_6(%arg0: i32) -> (i32, i32) {
    %c0_i32 = arith.constant 0 : i32
    %c0_i32_0 = arith.constant 0 : i32
    return %arg0, %c0_i32 : i32, i32
  }
  func.func @transform_7(%arg0: i32) -> (i32, i32) {
    %c0_i32 = arith.constant 0 : i32
    %c0_i32_0 = arith.constant 0 : i32
    return %arg0, %c0_i32 : i32, i32
  }
}

</mosaic_0001>

<bundles_post_ra>
// kernel: mlstm_pallas.1
= control target key start
LH: loop header
LB: loop body
LE: loop exit
PB: predicated region body
PF: predicated region fallthrough
CT: control target
= control target key end

     0   :  { %13 = vsyncpa [#allocation3], 0  ;;  %s2045_s0 = inlined_call_operand.vmem [shape: f32[32,32], index: 0, kind: input, shape index: {}]   ;;  %s2046_s1 = inlined_call_operand.vmem [shape: f32[32,256], index: 1, kind: input, shape index: {}]   ;;  %s2047_s2 = inlined_call_operand.vmem [shape: f32[1,256], index: 2, kind: input, shape index: {}]   ;;  %s2048_s3 = inlined_call_operand.vmem [shape: f32[32,1024], index: 3, kind: input, shape index: {}, may-alias: {3,6}]   ;;  %s2049_s4 = inlined_call_operand.vmem [shape: f32[32,32], index: 4, kind: input, shape index: {}, may-alias: {4,7}]   ;;  %s2050_s5 = inlined_call_operand.hbm [shape: f32[32,32], index: 5, kind: output, shape index: {0}]   ;;  %s2051_s6 = inlined_call_operand.vmem [shape: f32[32,1024], index: 6, kind: output, shape index: {1}, may-alias: {3,6}]   ;;  %s2052_s7 = inlined_call_operand.vmem [shape: f32[32,32], index: 7, kind: output, shape index: {2}, may-alias: {4,7}]  }
   0x1   :  { %15 = vsyncpa [#allocation3 + $0x1], 0  ;;  %s1553_s24 = smov 0   ;;  %s1555_s25 = smov 0  }
   0x2   :  { %s1557_s26 = smov 0   ;;  %s1559_s27 = smov 0  }
   0x3 LB: > { %s1574_s28 = sadd.s32 4294967295, %s1471_s27   ;;  %s1265_s29 = sadd.s32 4294967294, %s1471_s27   ;;  %s1471_s27 = sphi %s1559_s27, %s2058_s27   ;;  %s1467_s26 = sphi %s1557_s26, %s2057_s26   ;;  %s1463_s25 = sphi %s1555_s25, %s2056_s25   ;;  %s1459_s24 = sphi %s1553_s24, %s2055_s24  }
   0x4   : > { %s1578_s30 = sadd.s32 1, %s1471_s27   ;;  %s148_s8 = sadd.s32 1, %s1467_s26 }
   0x5   : > { %s145_s9 = ssub.s32 %s1471_s27, %s1578_s30  ;;  %p158_p0 = scmp.ne.s32.totalorder %s1467_s26, %s1463_s25 }
   0x6   : > { %p146_p1 = scmp.eq.s32.totalorder %s145_s9, 0  ;;  %p159_p2 = scmp.eq.s32.totalorder %s1574_s28, 3 }
   0x7   : > { %p164_p3 = scmp.ne.s32.totalorder %s1463_s25, %s1459_s24  ;;  %p165_p4 = scmp.eq.s32.totalorder %s1265_s29, 3 }
   0x8   : > { %s1589_s10 = scalar_select %p146_p1, %s1467_s26, %s148_s8  }
   0x9   : > { %p1591_p5 = por %p159_p2, %p158_p0  ;;  %p1595_p6 = por %p165_p4, %p164_p3 }
   0xa   : > { %p1268_p7 = scmp.ge.s32.totalorder %s1471_s27, 1  ;;  %p263_p8 = scmp.lt.s32.totalorder %s1471_s27, 5 }
   0xc   : > { %p264_p9 = pnand %p1268_p7, %p263_p8 }
   0xd   : > { %p312_p10 = scmp.lt.s32.totalorder (!%p264_p9), %s1574_s28, 3  ;;  %s1475_s22 = smov (!%p264_p9), 64  }
   0xe   : > { %267 = sbr.rel (%p264_p9) target bundleno = 1906 (0x772), region = 40  ;;  %s1476_s29 = smov (!%p264_p9), 32  }
   0xf   : > { %s1477_s8 = smov (!%p264_p9), 96   ;;  %s296_s15 = sand.u32 (!%p264_p9), 1, %s1463_s25  }
  0x10   : > { %s1281_s17 = sshll.u32 (!%p264_p9), %s1574_s28, 7 }
  0x13   : > { %v342_v0 = vld [vmem:[%s2046_s1 + $0x38] sm:$0xff]  ;;  %v341_v1 = vld [vmem:[%s2046_s1 + $0x30] sm:$0xff]  ;;  %v340_v2 = vld [vmem:[%s2046_s1 + $0x28] sm:$0xff]  ;;  %v1473_v4 = vmov 0.0   ;;  %s1618_s23 = scalar_select %p312_p10, %s1574_s28, 3  ;;  %vm355_vm0 = vcmask 261120   ;;  %v345_v11 = vlaneseq }
  0x14   : > { %383 = vmatprep.subr.mxu0 %v342_v0  ;;  %v339_v3 = vld [vmem:[%s2046_s1 + $0x20] sm:$0xff]  ;;  %423 = vmatprep.mubr.f32.mxu0 %v1473_v4  ;;  %v338_v5 = vld [vmem:[%s2046_s1 + $0x18] sm:$0xff]  ;;  %v337_v6 = vld [vmem:[%s2046_s1 + $0x10] sm:$0xff]  ;;  %v1474_v10 = vmov 0   ;;  %v1478_v24 = vmov 64   ;;  %v1479_v28 = vmov 1  }
  0x15   : > { %384 = vmatpush1.msra.mxu0 %v341_v1  ;;  %v336_v7 = vld [vmem:[%s2046_s1 + $0x8] sm:$0xff]  ;;  %s1627_s14 = sshll.u32 %s1618_s23, 3  ;;  %v335_v8 = vld [vmem:[%s2046_s1] sm:$0xff]  ;;  %1364 = vset.pattern.permute.xlu0 %v1474_v10  ;;  %v346_v12 = vshrl.u32 %v345_v11, 7  ;;  %v1480_v30 = vmov 65   ;;  %v1481_v35 = vmov 67  }
  0x16   : > { %385 = vmatprep.subr.mxu0 %v340_v2  ;;  %s315_s19 = scalar_lea.vmem %s2045_s0, %s1627_s14  ;;  %v343_v14 = vld [vmem:[%s2047_s2] sm:$0x3]  ;;  %1366 = vset.pattern.permute.xlu1 %v1478_v24  ;;  %v1482_v36 = vmov 66   ;;  %v1483_v37 = vmov 69   ;;  %v1484_v38 = vmov 68   ;;  %v1485_v39 = vmov 71   ;;  %s324_s21 = scalar_lea.vmem %s2049_s4, %s1627_s14 }
  0x17   : > { %386 = vmatpush1.msra.mxu0 %v339_v3  ;;  %v334_v9 = vld [vmem:[%s315_s19] sm:$0xff]  ;;  %v347_v13 = vsub.s32 0, %v346_v12  ;;  %v351_v15 = vsub.s32 1, %v346_v12  ;;  %v1486_v40 = vmov 70   ;;  %v1487_v41 = vmov 72   ;;  %s1284_s9 = sshll.u32 %s1618_s23, 6  ;;  %s333_s13 = scalar_lea.vmem %s2052_s7, %s1627_s14 }
  0x18   : > { %387 = vmatprep.subr.mxu0 %v338_v5  ;;  %v1488_v42 = vmov 73   ;;  %v1489_v43 = vmov 74   ;;  %v1490_v44 = vmov 75   ;;  %v1491_v45 = vmov 76   ;;  %s1706_s16 = scalar_lea.vmem %s2048_s3, %s1284_s9  ;;  %s1783_s19 = scalar_lea.vmem %s2051_s6, %s1284_s9 }
  0x19   : > { %388 = vmatpush1.msra.mxu0 %v337_v6  ;;  %v348_v16 = vrot.slane %v343_v14, %v347_v13  ;;  %v352_v17 = vrot.slane %v343_v14, %v351_v15  ;;  %v1492_v46 = vmov 77   ;;  %v1493_v47 = vmov 78   ;;  %v453_v24 = vld [vmem:[%s1706_s16 + $0x18] sm:$0xff]  ;;  %s1511_s14 = smov 16  }
  0x1a   : > { %389 = vmatprep.subr.mxu0 %v336_v7  ;;  %v1494_v48 = vmov 80   ;;  %v1495_v49 = vmov 79   ;;  %v1496_v50 = vmov 82   ;;  %v1497_v51 = vmov 81  }
  0x1b   : > { %390 = vmatpush1.msra.mxu0 %v335_v8  ;;  %v1498_v52 = vmov 83   ;;  %v1499_v53 = vmov 84   ;;  %v1500_v54 = vmov 85   ;;  %vm995_vm1 = vcmask 523264  }
  0x1c   : > { %1277 = vmatmul.mubr.msk.f32.vlgmr.msra.gmra.mxu0 %vm355_vm0, %v334_v9  ;;  %vm997_vm2 = vcmask 785408   ;;  %vm1020_vm3 = vcmask 7168   ;;  %vm1022_vm4 = vcmask 15360   ;;  %vm1024_vm5 = vcmask 23552  }
  0x1d   : > { %vm1026_vm6 = vcmask 31744   ;;  %vm1028_vm7 = vcmask 39936   ;;  %vm1030_vm8 = vcmask 48128   ;;  %vm1032_vm9 = vcmask 56320  }
  0x1e   : > { %vm1034_vm10 = vcmask 64512   ;;  %vm1036_vm11 = vcmask 72704   ;;  %vm1038_vm12 = vcmask 80896   ;;  %vm1040_vm13 = vcmask 89088  }
  0x1f   : > { %vm1042_vm14 = vcmask 97280   ;;  %vm1044_vm15 = vcmask 105472  }
  0xdc   : > { %v425_v18 = vpop.f32.mrf.mxu0 }
  0xdd   : > { %v1640_v19 = vadd.f32 %v425_v18, %v348_v16 }
  0xde   : > { %v427_v20 = vpop.f32.mrf.mxu0 }
  0xdf   : > { %v428_v21 = vadd.f32 %v427_v20, %v352_v17  ;;  %507 = vrot.lane.b32.xlu1 %v1640_v19, %s1475_s22  ;;  %486 = vrot.lane.b32.xlu0 %v1640_v19, %s1476_s29  ;;  %v451_v20 = vld [vmem:[%s1706_s16 + $0x8] sm:$0xff] }
  0xe1   : > { %v436_v22 = vmul.f32 1.442695, %v428_v21  ;;  %v1279_v23 = vmul.f32 -1.442695, %v428_v21 }
  0xe3   : > { %1399 = vpow2.f32 %v436_v22  ;;  %528 = vrot.lane.b32.xlu0 %v1640_v19, %s1477_s8 }
  0xe4   : > { %1401 = vpow2.f32 %v1279_v23 }
  0xf0   : > { %v1400_v25 = vpop.eup %1399 }
  0xf1   : > { %v1402_v26 = vpop.eup %1401  ;;  %446 = vperm.xlu0 %1364, %v1400_v25  }
  0xf2   : > { %v441_v27 = vadd.f32 1.0, %v1402_v26 }
  0xf4   : > { %1403 = vrcp.f32 %v441_v27 }
  0xf5   : > { %1365 = vset.pattern.permute.xlu0 %v1479_v28 }
 0x101   : > { %v1404_v29 = vpop.eup %1403 }
 0x102   : > { %460 = vperm.xlu0 %1365, %v1404_v29  }
 0x106   : > { %1367 = vset.pattern.permute.xlu0 %v1480_v30 }
 0x151   : > { %v1648_v31 = vpop.permute.xlu0 %486  ;;  %v1677_v55 = vpop.permute.xlu1 %507 }
 0x155   : > { %v1650_v32 = vpop.permute.xlu0 %528 }
 0x16c   : > { %v447_v33 = vpop.permute.xlu0 %446 }
 0x16d   : > { %v1653_v34 = vmul.f32 %v447_v33, %v1640_v19 }
 0x16f   : > { %480 = vperm.xlu0 %1367, %v1653_v34   ;;  %466 = vperm.xlu1 %1366, %v1653_v34  }
 0x173   : > { %1369 = vset.pattern.permute.xlu0 %v1481_v35  ;;  %1368 = vset.pattern.permute.xlu1 %v1482_v36 }
 0x174   : > { %519 = vperm.xlu0 %1369, %v1653_v34   ;;  %498 = vperm.xlu1 %1368, %v1653_v34  }
 0x178   : > { %1371 = vset.pattern.permute.xlu0 %v1483_v37  ;;  %1370 = vset.pattern.permute.xlu1 %v1484_v38 }
 0x179   : > { %555 = vperm.xlu0 %1371, %v1653_v34   ;;  %541 = vperm.xlu1 %1370, %v1653_v34  }
 0x17d   : > { %1373 = vset.pattern.permute.xlu0 %v1485_v39  ;;  %1372 = vset.pattern.permute.xlu1 %v1486_v40  ;;  %v1679_v56 = vpop.permute.xlu0 %460  ;;  %v450_v40 = vld [vmem:[%s1706_s16] sm:$0xff] }
 0x17e   : > { %587 = vperm.xlu0 %1373, %v1653_v34   ;;  %569 = vperm.xlu1 %1372, %v1653_v34   ;;  %v1714_v23 = vmul.f32 %v1679_v56, %v451_v20  ;;  %v1724_v33 = vmul.f32 %v1679_v56, %v453_v24 }
 0x182   : > { %1374 = vset.pattern.permute.xlu0 %v1487_v41  ;;  %1375 = vset.pattern.permute.xlu1 %v1488_v42  ;;  %v455_v41 = vld [vmem:[%s1706_s16 + $0x28] sm:$0xff] }
 0x183   : > { %606 = vperm.xlu0 %1374, %v1653_v34   ;;  %620 = vperm.xlu1 %1375, %v1653_v34  }
 0x187   : > { %1376 = vset.pattern.permute.xlu0 %v1489_v43  ;;  %1377 = vset.pattern.permute.xlu1 %v1490_v44 }
 0x188   : > { %634 = vperm.xlu0 %1376, %v1653_v34   ;;  %652 = vperm.xlu1 %1377, %v1653_v34  }
 0x18c   : > { %1378 = vset.pattern.permute.xlu0 %v1491_v45  ;;  %1379 = vset.pattern.permute.xlu1 %v1492_v46 }
 0x18d   : > { %671 = vperm.xlu0 %1378, %v1653_v34   ;;  %685 = vperm.xlu1 %1379, %v1653_v34  }
 0x191   : > { %1380 = vset.pattern.permute.xlu0 %v1493_v47  ;;  %1382 = vset.pattern.permute.xlu1 %v1494_v48  ;;  %v463_v47 = vmul.f32 %v1679_v56, %v450_v40  ;;  %v1744_v48 = vmul.f32 %v1679_v56, %v455_v41 }
 0x192   : > { %699 = vperm.xlu0 %1380, %v1653_v34   ;;  %736 = vperm.xlu1 %1382, %v1653_v34  }
 0x196   : > { %1381 = vset.pattern.permute.xlu0 %v1495_v49  ;;  %1384 = vset.pattern.permute.xlu1 %v1496_v50  ;;  %v452_v50 = vld [vmem:[%s1706_s16 + $0x10] sm:$0xff] }
 0x197   : > { %717 = vperm.xlu0 %1381, %v1653_v34   ;;  %764 = vperm.xlu1 %1384, %v1653_v34  }
 0x19b   : > { %1383 = vset.pattern.permute.xlu0 %v1497_v51  ;;  %1385 = vset.pattern.permute.xlu1 %v1498_v52 }
 0x19c   : > { %750 = vperm.xlu0 %1383, %v1653_v34   ;;  %782 = vperm.xlu1 %1385, %v1653_v34  }
 0x1a0   : > { %1386 = vset.pattern.permute.xlu0 %v1499_v53  ;;  %1387 = vset.pattern.permute.xlu1 %v1500_v54 }
 0x1a1   : > { %801 = vperm.xlu0 %1386, %v1653_v34   ;;  %815 = vperm.xlu1 %1387, %v1653_v34  }
 0x1ea   : > { %v467_v57 = vpop.permute.xlu1 %466  ;;  %v481_v58 = vpop.permute.xlu0 %480 }
 0x1eb   : > { %v469_v59 = vmul.f32 %v467_v57, %v1640_v19  ;;  %v483_v42 = vmul.f32 %v481_v58, %v1640_v19  ;;  %v604_v57 = vmul.f32 %v1679_v56, %v452_v50 }
 0x1ed   : > { %471 = vrot.lane.b32.xlu1 %v469_v59, %s1477_s8  ;;  %v484_v51 = vadd.f32 %v483_v42, %v463_v47  ;;  %v454_v59 = vld [vmem:[%s1706_s16 + $0x20] sm:$0xff] }
 0x1ef   : > { %v499_v60 = vpop.permute.xlu1 %498  ;;  %v520_v61 = vpop.permute.xlu0 %519 }
 0x1f0   : > { %v501_v62 = vmul.f32 %v499_v60, %v1640_v19  ;;  %v522_v63 = vmul.f32 %v520_v61, %v1640_v19 }
 0x1f2   : > { %503 = vrot.lane.b32.xlu0 %v501_v62, %s1476_s29  ;;  %v489_v62 = vmul.f32 %v1648_v31, %v484_v51 }
 0x1f4   : > { %v542_v0 = vpop.permute.xlu1 %541  ;;  %v556_v1 = vpop.permute.xlu0 %555 }
 0x1f5   : > { %v544_v2 = vmul.f32 %v542_v0, %v1640_v19  ;;  %v558_v22 = vmul.f32 %v556_v1, %v1640_v19 }
 0x1f6   : > { %524 = vrot.lane.b32.xlu0 %v522_v63, %s1475_s22  ;;  %v1764_v63 = vmul.f32 %v1679_v56, %v454_v59 }
 0x1f7   : > { %546 = vrot.lane.b32.xlu1 %v544_v2, %s1477_s8  ;;  %v1718_v27 = vadd.f32 %v558_v22, %v1714_v23 }
 0x1f9   : > { %v570_v3 = vpop.permute.xlu1 %569  ;;  %v588_v4 = vpop.permute.xlu0 %587  ;;  %v560_v39 = vmul.f32 %v1718_v27, %v1648_v31 }
 0x1fa   : > { %v572_v5 = vmul.f32 %v570_v3, %v1640_v19  ;;  %v590_v6 = vmul.f32 %v588_v4, %v1640_v19  ;;  %v1501_v3 = vmov 86   ;;  %v1502_v4 = vmov 87  }
 0x1fb   : > { %1388 = vset.pattern.permute.xlu0 %v1501_v3  ;;  %1389 = vset.pattern.permute.xlu1 %v1502_v4 }
 0x1fc   : > { %574 = vrot.lane.b32.xlu1 %v572_v5, %s1476_s29 }
 0x1fe   : > { %v621_v7 = vpop.permute.xlu1 %620  ;;  %v607_v8 = vpop.permute.xlu0 %606 }
 0x1ff   : > { %v609_v9 = vmul.f32 %v607_v8, %v1640_v19  ;;  %v623_v52 = vmul.f32 %v621_v7, %v1640_v19 }
 0x200   : > { %592 = vrot.lane.b32.xlu1 %v590_v6, %s1475_s22 }
 0x201   : > { %611 = vrot.lane.b32.xlu0 %v609_v9, %s1477_s8  ;;  %v624_v60 = vadd.f32 %v623_v52, %v604_v57 }
 0x203   : > { %v653_v10 = vpop.permute.xlu1 %652  ;;  %v635_v11 = vpop.permute.xlu0 %634  ;;  %v625_v1 = vmul.f32 %v624_v60, %v1648_v31 }
 0x204   : > { %v655_v12 = vmul.f32 %v653_v10, %v1640_v19  ;;  %v637_v13 = vmul.f32 %v635_v11, %v1640_v19 }
 0x206   : > { %657 = vrot.lane.b32.xlu1 %v655_v12, %s1475_s22  ;;  %639 = vrot.lane.b32.xlu0 %v637_v13, %s1476_s29 }
 0x208   : > { %v686_v14 = vpop.permute.xlu1 %685  ;;  %v672_v15 = vpop.permute.xlu0 %671 }
 0x209   : > { %v674_v16 = vmul.f32 %v672_v15, %v1640_v19  ;;  %v688_v28 = vmul.f32 %v686_v14, %v1640_v19  ;;  %v1790_v15 = vld [vmem:[%s1706_s16 + $0x30] sm:$0xff] }
 0x20b   : > { %676 = vrot.lane.b32.xlu1 %v674_v16, %s1477_s8  ;;  %v1729_v35 = vadd.f32 %v688_v28, %v1724_v33  ;;  %v1793_v16 = vld [vmem:[%s1706_s16 + $0x38] sm:$0xff]  ;;  %s1269_s16 = sshll.u32 %s296_s15, 3 }
 0x20c   : > { %s298_s18 = scalar_lea.vmem [#allocation2], %s1269_s16 }
 0x20d   : > { %v737_v17 = vpop.permute.xlu1 %736  ;;  %v700_v18 = vpop.permute.xlu0 %699  ;;  %v690_v44 = vmul.f32 %v1729_v35, %v1648_v31 }
 0x20e   : > { %v702_v21 = vmul.f32 %v700_v18, %v1640_v19  ;;  %v739_v36 = vmul.f32 %v737_v17, %v1640_v19 }
 0x210   : > { %704 = vrot.lane.b32.xlu1 %v702_v21, %s1476_s29 }
 0x212   : > { %v765_v25 = vpop.permute.xlu1 %764  ;;  %v718_v26 = vpop.permute.xlu0 %717 }
 0x213   : > { %v767_v29 = vmul.f32 %v765_v25, %v1640_v19  ;;  %v720_v30 = vmul.f32 %v718_v26, %v1640_v19 }
 0x215   : > { %769 = vrot.lane.b32.xlu1 %v767_v29, %s1476_s29  ;;  %722 = vrot.lane.b32.xlu0 %v720_v30, %s1475_s22 }
 0x217   : > { %v783_v37 = vpop.permute.xlu1 %782  ;;  %v751_v38 = vpop.permute.xlu0 %750 }
 0x218   : > { %v785_v43 = vmul.f32 %v783_v37, %v1640_v19  ;;  %v753_v61 = vmul.f32 %v751_v38, %v1640_v19 }
 0x219   : > { %562 = vrot.lane.b32.xlu1 %v560_v39, %s1477_s8  ;;  %741 = vrot.lane.b32.xlu0 %v739_v36, %s1477_s8 }
 0x21a   : > { %v1768_v0 = vadd.f32 %v753_v61, %v1764_v63 }
 0x21c   : > { %v816_v45 = vpop.permute.xlu1 %815  ;;  %v802_v46 = vpop.permute.xlu0 %801  ;;  %v755_v2 = vmul.f32 %v1768_v0, %v1648_v31 }
 0x21d   : > { %v818_v49 = vmul.f32 %v816_v45, %v1640_v19  ;;  %692 = vrot.lane.b32.xlu1 %v690_v44, %s1477_s8  ;;  %787 = vrot.lane.b32.xlu0 %v785_v43, %s1475_s22  ;;  %v804_v54 = vmul.f32 %v802_v46, %v1640_v19 }
 0x21f   : > { %v1752_v53 = vadd.f32 %v818_v49, %v1744_v48 }
 0x221   : > { %806 = vrot.lane.b32.xlu0 %v804_v54, %s1477_s8  ;;  %v820_v58 = vmul.f32 %v1752_v53, %v1648_v31 }
 0x223   : > { %822 = vrot.lane.b32.xlu1 %v820_v58, %s1477_s8 }
 0x225   : > { %491 = vrot.lane.b32.xlu0 %v489_v62, %s1477_s8 }
 0x229   : > { %627 = vrot.lane.b32.xlu0 %v625_v1, %s1477_s8 }
 0x22d   : > { %757 = vrot.lane.b32.xlu0 %v755_v2, %s1477_s8 }
 0x25f   : > { %v472_v5 = vpop.permute.xlu1 %471 }
 0x260   : > { %v1775_v7 = vadd.f32 %v472_v5, %v463_v47 }
 0x262   : > { %v994_v11 = vsel %vm355_vm0, %v1775_v7, %v484_v51 }
 0x264   : > { %v504_v6 = vpop.permute.xlu0 %503 }
 0x265   : > { %v506_v8 = vadd.f32 %v504_v6, %v463_v47 }
 0x267   : > { %v510_v9 = vmul.f32 %v1677_v55, %v506_v8  ;;  %v996_v14 = vsel %vm995_vm1, %v994_v11, %v506_v8 }
 0x268   : > { %v525_v10 = vpop.permute.xlu0 %524 }
 0x269   : > { %v527_v12 = vadd.f32 %v525_v10, %v463_v47  ;;  %v547_v13 = vpop.permute.xlu1 %546  ;;  %512 = vrot.lane.b32.xlu1 %v510_v9, %s1475_s22 }
 0x26a   : > { %v1800_v21 = vadd.f32 %v547_v13, %v1714_v23 }
 0x26b   : > { %v531_v17 = vmul.f32 %v1650_v32, %v527_v12  ;;  %v998_v18 = vsel %vm997_vm2, %v996_v14, %v527_v12 }
 0x26c   : > { %1095 = vst [vmem:[%s1783_s19] sm:$0xff] %v998_v18  ;;  %v999_v26 = vsel %vm355_vm0, %v1800_v21, %v1718_v27  ;;  %v475_v18 = vmul.f32 %v1775_v7, %v1640_v19 }
 0x26d   : > { %533 = vrot.lane.b32.xlu0 %v531_v17, %s1476_s29 }
 0x26e   : > { %v575_v20 = vpop.permute.xlu1 %574 }
 0x26f   : > { %v577_v22 = vadd.f32 %v575_v20, %v1714_v23 }
 0x271   : > { %v578_v24 = vmul.f32 %v577_v22, %v1677_v55  ;;  %v1000_v30 = vsel %vm995_vm1, %v999_v26, %v577_v22  ;;  %v550_v26 = vmul.f32 %v1800_v21, %v1640_v19 }
 0x272   : > { %v593_v25 = vpop.permute.xlu1 %592 }
 0x273   : > { %v595_v28 = vadd.f32 %v593_v25, %v1714_v23  ;;  %580 = vrot.lane.b32.xlu1 %v578_v24, %s1475_s22  ;;  %v612_v29 = vpop.permute.xlu0 %611  ;;  %v476_v25 = vsel %vm355_vm0, %v475_v18, 0.0  ;;  %v551_v7 = vsel %vm355_vm0, %v550_v26, 0.0 }
 0x274   : > { %v614_v38 = vadd.f32 %v612_v29, %v604_v57 }
 0x275   : > { %v596_v36 = vmul.f32 %v595_v28, %v1650_v32  ;;  %v1001_v37 = vsel %vm997_vm2, %v1000_v30, %v595_v28 }
 0x276   : > { %1096 = vst [vmem:[%s1783_s19 + $0x8] sm:$0xff] %v1001_v37  ;;  %v1002_v23 = vsel %vm355_vm0, %v614_v38, %v624_v60  ;;  %v615_v13 = vmul.f32 %v614_v38, %v1640_v19 }
 0x277   : > { %598 = vrot.lane.b32.xlu1 %v596_v36, %s1476_s29 }
 0x278   : > { %v658_v39 = vpop.permute.xlu1 %657  ;;  %v640_v40 = vpop.permute.xlu0 %639  ;;  %v616_v14 = vsel %vm355_vm0, %v615_v13, 0.0 }
 0x279   : > { %v660_v41 = vadd.f32 %v658_v39, %v604_v57  ;;  %v642_v27 = vadd.f32 %v640_v40, %v604_v57  ;;  %v1503_v40 = vmov 90  }
 0x27b   : > { %v661_v42 = vmul.f32 %v660_v41, %v1650_v32  ;;  %v643_v43 = vmul.f32 %v642_v27, %v1677_v55  ;;  %v1003_v44 = vsel %vm995_vm1, %v1002_v23, %v642_v27 }
 0x27c   : > { %v1004_v45 = vsel %vm997_vm2, %v1003_v44, %v660_v41  ;;  %v1504_v41 = vmov 91  }
 0x27d   : > { %1097 = vst [vmem:[%s1783_s19 + $0x10] sm:$0xff] %v1004_v45  ;;  %v677_v46 = vpop.permute.xlu1 %676  ;;  %663 = vrot.lane.b32.xlu1 %v661_v42, %s1476_s29  ;;  %645 = vrot.lane.b32.xlu0 %v643_v43, %s1475_s22 }
 0x27e   : > { %v679_v50 = vadd.f32 %v677_v46, %v1724_v33 }
 0x280   : > { %v1005_v57 = vsel %vm355_vm0, %v679_v50, %v1729_v35  ;;  %v680_v17 = vmul.f32 %v679_v50, %v1640_v19 }
 0x282   : > { %v705_v47 = vpop.permute.xlu1 %704  ;;  %v681_v22 = vsel %vm355_vm0, %v680_v17, 0.0 }
 0x283   : > { %v707_v49 = vadd.f32 %v705_v47, %v1724_v33 }
 0x285   : > { %v708_v51 = vmul.f32 %v707_v49, %v1677_v55  ;;  %v1006_v60 = vsel %vm995_vm1, %v1005_v57, %v707_v49 }
 0x287   : > { %v770_v52 = vpop.permute.xlu1 %769  ;;  %710 = vrot.lane.b32.xlu1 %v708_v51, %s1475_s22  ;;  %v723_v54 = vpop.permute.xlu0 %722 }
 0x288   : > { %v772_v58 = vadd.f32 %v770_v52, %v1764_v63  ;;  %v725_v59 = vadd.f32 %v723_v54, %v1724_v33 }
 0x28a   : > { %v773_v61 = vmul.f32 %v772_v58, %v1677_v55  ;;  %v726_v62 = vmul.f32 %v725_v59, %v1650_v32  ;;  %v1007_v1 = vsel %vm997_vm2, %v1006_v60, %v725_v59 }
 0x28b   : > { %1098 = vst [vmem:[%s1783_s19 + $0x18] sm:$0xff] %v1007_v1  ;;  %v742_v2 = vpop.permute.xlu0 %741  ;;  %v563_v12 = vpop.permute.xlu1 %562 }
 0x28c   : > { %v744_v3 = vadd.f32 %v742_v2, %v1764_v63  ;;  %775 = vrot.lane.b32.xlu1 %v773_v61, %s1475_s22  ;;  %728 = vrot.lane.b32.xlu0 %v726_v62, %s1476_s29 }
 0x28e   : > { %v1008_v33 = vsel %vm355_vm0, %v744_v3, %v1768_v0  ;;  %v565_v0 = vsel %vm355_vm0, %v563_v12, 0.0  ;;  %v745_v21 = vmul.f32 %v744_v3, %v1640_v19 }
 0x28f   : > { %v788_v35 = vpop.permute.xlu0 %787  ;;  %v1009_v5 = vsel %vm995_vm1, %v1008_v33, %v772_v58  ;;  %v693_v37 = vpop.permute.xlu1 %692  ;;  %v1505_v33 = vmov 94  }
 0x290   : > { %v790_v4 = vadd.f32 %v788_v35, %v1764_v63  ;;  %v695_v38 = vsel %vm355_vm0, %v693_v37, 0.0  ;;  %v746_v39 = vsel %vm355_vm0, %v745_v21, 0.0  ;;  %v1506_v35 = vmov 95  }
 0x292   : > { %v791_v6 = vmul.f32 %v790_v4, %v1650_v32  ;;  %v1010_v8 = vsel %vm997_vm2, %v1009_v5, %v790_v4 }
 0x293   : > { %1099 = vst [vmem:[%s1783_s19 + $0x20] sm:$0xff] %v1010_v8  ;;  %v807_v9 = vpop.permute.xlu0 %806 }
 0x294   : > { %793 = vrot.lane.b32.xlu1 %v791_v6, %s1476_s29  ;;  %v1854_v20 = vadd.f32 %v807_v9, %v1744_v48 }
 0x295   : > { %v823_v27 = vpop.permute.xlu1 %822 }
 0x296   : > { %v810_v29 = vmul.f32 %v1854_v20, %v1640_v19  ;;  %v825_v51 = vsel %vm355_vm0, %v823_v27, 0.0 }
 0x297   : > { %v492_v10 = vpop.permute.xlu0 %491 }
 0x298   : > { %v494_v11 = vsel %vm355_vm0, %v492_v10, 0.0  ;;  %v811_v30 = vsel %vm355_vm0, %v810_v29, 0.0 }
 0x29b   : > { %v628_v63 = vpop.permute.xlu0 %627 }
 0x29c   : > { %v630_v36 = vsel %vm355_vm0, %v628_v63, 0.0 }
 0x29f   : > { %v758_v24 = vpop.permute.xlu0 %757 }
 0x2a0   : > { %v760_v28 = vsel %vm355_vm0, %v758_v24, 0.0 }
 0x2ab   : > { %495 = vadd.xlane.f32.xlu0 %v494_v11 }
 0x2af   : > { %566 = vadd.xlane.f32.xlu0 %v565_v0 }
 0x2b3   : > { %617 = vadd.xlane.f32.xlu0 %v616_v14  ;;  %v1507_v14 = vmov 88  }
 0x2b7   : > { %682 = vadd.xlane.f32.xlu0 %v681_v22 }
 0x2b8   : > { %477 = vadd.xlane.f32.xlu1 %v476_v25 }
 0x2bb   : > { %761 = vadd.xlane.f32.xlu0 %v760_v28 }
 0x2bc   : > { %552 = vadd.xlane.f32.xlu1 %v551_v7 }
 0x2bf   : > { %812 = vadd.xlane.f32.xlu0 %v811_v30 }
 0x2c0   : > { %631 = vadd.xlane.f32.xlu1 %v630_v36 }
 0x2c4   : > { %696 = vadd.xlane.f32.xlu1 %v695_v38 }
 0x2c8   : > { %747 = vadd.xlane.f32.xlu1 %v746_v39 }
 0x2d5   : > { %829 = vperm.xlu0 %1388, %v1653_v34  }
 0x2d9   : > { %847 = vperm.xlu1 %1389, %v1653_v34   ;;  %1390 = vset.pattern.permute.xlu0 %v1503_v40 }
 0x2db   : > { %v513_v23 = vpop.permute.xlu1 %512 }
 0x2dc   : > { %v515_v58 = vsel %vm355_vm0, %v513_v23, 0.0 }
 0x2dd   : > { %1391 = vset.pattern.permute.xlu1 %v1504_v41 }
 0x2df   : > { %v534_v43 = vpop.permute.xlu0 %533 }
 0x2e0   : > { %v536_v45 = vsel %vm355_vm0, %v534_v43, 0.0 }
 0x2e5   : > { %v581_v42 = vpop.permute.xlu1 %580 }
 0x2e6   : > { %v583_v60 = vsel %vm355_vm0, %v581_v42, 0.0 }
 0x2e9   : > { %v599_v44 = vpop.permute.xlu1 %598 }
 0x2ea   : > { %v601_v61 = vsel %vm355_vm0, %v599_v44, 0.0 }
 0x2ef   : > { %v646_v46 = vpop.permute.xlu0 %645  ;;  %v664_v47 = vpop.permute.xlu1 %663 }
 0x2f0   : > { %v648_v49 = vsel %vm355_vm0, %v646_v46, 0.0  ;;  %v666_v62 = vsel %vm355_vm0, %v664_v47, 0.0 }
 0x2f4   : > { %537 = vadd.xlane.f32.xlu0 %v536_v45 }
 0x2f8   : > { %649 = vadd.xlane.f32.xlu0 %v648_v49 }
 0x2f9   : > { %v711_v50 = vpop.permute.xlu1 %710 }
 0x2fa   : > { %v713_v1 = vsel %vm355_vm0, %v711_v50, 0.0 }
 0x2fd   : > { %826 = vadd.xlane.f32.xlu1 %v825_v51 }
 0x2fe   : > { %v729_v52 = vpop.permute.xlu0 %728  ;;  %v776_v57 = vpop.permute.xlu1 %775 }
 0x2ff   : > { %v731_v54 = vsel %vm355_vm0, %v729_v52, 0.0  ;;  %v778_v59 = vsel %vm355_vm0, %v776_v57, 0.0 }
 0x300   : > { %732 = vadd.xlane.f32.xlu0 %v731_v54 }
 0x301   : > { %516 = vadd.xlane.f32.xlu1 %v515_v58 }
 0x304   : > { %779 = vadd.xlane.f32.xlu0 %v778_v59 }
 0x305   : > { %584 = vadd.xlane.f32.xlu1 %v583_v60 }
 0x306   : > { %v794_v2 = vpop.permute.xlu1 %793 }
 0x307   : > { %v796_v3 = vsel %vm355_vm0, %v794_v2, 0.0 }
 0x309   : > { %602 = vadd.xlane.f32.xlu1 %v601_v61 }
 0x30d   : > { %667 = vadd.xlane.f32.xlu1 %v666_v62 }
 0x311   : > { %714 = vadd.xlane.f32.xlu1 %v713_v1 }
 0x315   : > { %797 = vadd.xlane.f32.xlu1 %v796_v3  ;;  %v1011_v3 = vsel %vm355_vm0, %v1854_v20, %v1752_v53  ;;  %v1510_v20 = vmov 93  }
 0x31a   : > { %894 = vperm.xlu0 %1390, %v1653_v34  }
 0x31e   : > { %1392 = vset.pattern.permute.xlu0 %v1505_v33 }
 0x31f   : > { %959 = vperm.xlu0 %1392, %v1653_v34  }
 0x323   : > { %1394 = vset.pattern.permute.xlu0 %v1507_v14 }
 0x326   : > { %912 = vperm.xlu1 %1391, %v1653_v34  }
 0x32a   : > { %1393 = vset.pattern.permute.xlu1 %v1506_v35 }
 0x32b   : > { %977 = vperm.xlu1 %1393, %v1653_v34  }
 0x334   : > { %v496_v4 = vpop.xlane.xlu0 %495 }
 0x338   : > { %v567_v5 = vpop.xlane.xlu0 %566 }
 0x33c   : > { %v618_v6 = vpop.xlane.xlu0 %617 }
 0x340   : > { %v683_v8 = vpop.xlane.xlu0 %682 }
 0x341   : > { %v478_v9 = vpop.xlane.xlu1 %477 }
 0x342   : > { %v1021_v10 = vsel %vm1020_vm3, %v478_v9, %v496_v4 }
 0x344   : > { %v762_v12 = vpop.xlane.xlu0 %761 }
 0x345   : > { %v553_v11 = vpop.xlane.xlu1 %552 }
 0x348   : > { %v813_v13 = vpop.xlane.xlu0 %812 }
 0x349   : > { %v632_v0 = vpop.xlane.xlu1 %631 }
 0x34d   : > { %v697_v63 = vpop.xlane.xlu1 %696 }
 0x350   : > { %v830_v17 = vpop.permute.xlu0 %829 }
 0x351   : > { %v832_v18 = vmul.f32 %v830_v17, %v1640_v19  ;;  %v748_v22 = vpop.xlane.xlu1 %747 }
 0x352   : > { %v1050_v24 = vsel %vm1020_vm3, %v748_v22, %v762_v12  ;;  %vm1046_vm3 = vcmask 113664  }
 0x353   : > { %834 = vrot.lane.b32.xlu1 %v832_v18, %s1476_s29 }
 0x355   : > { %v848_v26 = vpop.permute.xlu1 %847 }
 0x37d   : > { %v538_v25 = vpop.xlane.xlu0 %537 }
 0x381   : > { %v650_v28 = vpop.xlane.xlu0 %649 }
 0x386   : > { %v827_v29 = vpop.xlane.xlu1 %826 }
 0x389   : > { %v733_v7 = vpop.xlane.xlu0 %732 }
 0x38a   : > { %v517_v30 = vpop.xlane.xlu1 %516 }
 0x38b   : > { %v1023_v36 = vsel %vm1022_vm4, %v1021_v10, %v517_v30 }
 0x38c   : > { %v1025_v37 = vsel %vm1024_vm5, %v1023_v36, %v538_v25 }
 0x38d   : > { %v780_v38 = vpop.xlane.xlu0 %779  ;;  %v1027_v21 = vsel %vm1026_vm6, %v1025_v37, %v553_v11  ;;  %v864_v37 = vmul.f32 %v1679_v56, %v1790_v15 }
 0x38e   : > { %v1051_v39 = vsel %vm1022_vm4, %v1050_v24, %v780_v38  ;;  %v585_v40 = vpop.xlane.xlu1 %584  ;;  %v1029_v41 = vsel %vm1028_vm7, %v1027_v21, %v567_v5  ;;  %vm1048_vm4 = vcmask 121856   ;;  %v850_v5 = vmul.f32 %v848_v26, %v1640_v19 }
 0x38f   : > { %v1031_v27 = vsel %vm1030_vm8, %v1029_v41, %v585_v40 }
 0x392   : > { %v603_v23 = vpop.xlane.xlu1 %602 }
 0x393   : > { %v1033_v42 = vsel %vm1032_vm9, %v1031_v27, %v603_v23 }
 0x394   : > { %v1035_v43 = vsel %vm1034_vm10, %v1033_v42, %v618_v6  ;;  %v1508_v6 = vmov 89  }
 0x395   : > { %v1037_v44 = vsel %vm1036_vm11, %v1035_v43, %v632_v0  ;;  %v895_v53 = vpop.permute.xlu0 %894 }
 0x396   : > { %v668_v45 = vpop.xlane.xlu1 %667  ;;  %v1039_v46 = vsel %vm1038_vm12, %v1037_v44, %v650_v28 }
 0x397   : > { %v1041_v47 = vsel %vm1040_vm13, %v1039_v46, %v668_v45 }
 0x398   : > { %v1043_v49 = vsel %vm1042_vm14, %v1041_v47, %v683_v8  ;;  %v1509_v8 = vmov 92  }
 0x399   : > { %v1045_v50 = vsel %vm1044_vm15, %v1043_v49, %v697_v63 }
 0x39a   : > { %v715_v51 = vpop.xlane.xlu1 %714  ;;  %v960_v10 = vpop.permute.xlu0 %959 }
 0x39b   : > { %v1047_v52 = vsel %vm1046_vm3, %v1045_v50, %v715_v51  ;;  %v962_v11 = vmul.f32 %v960_v10, %v1640_v19  ;;  %v929_v51 = vmul.f32 %v1679_v56, %v1793_v16 }
 0x39c   : > { %v1902_v54 = vsel %vm1048_vm4, %v1047_v52, %v733_v7 }
 0x39e   : > { %v798_v57 = vpop.xlane.xlu1 %797 }
 0x39f   : > { %v1052_v58 = vsel %vm1024_vm5, %v1051_v39, %v798_v57 }
 0x3a0   : > { %v1053_v59 = vsel %vm1026_vm6, %v1052_v58, %v813_v13 }
 0x3a1   : > { %v1054_v60 = vsel %vm1028_vm7, %v1053_v59, %v827_v29 }
 0x3a2   : > { %v913_v61 = vpop.permute.xlu1 %912 }
 0x3a3   : > { %v915_v9 = vmul.f32 %v913_v61, %v1640_v19 }
 0x3a6   : > { %v978_v62 = vpop.permute.xlu1 %977 }
 0x3a7   : > { %v980_v12 = vmul.f32 %v978_v62, %v1640_v19 }
 0x3c5   : > { %v835_v1 = vpop.permute.xlu1 %834 }
 0x3c6   : > { %v837_v2 = vadd.f32 %v835_v1, %v1744_v48 }
 0x3c8   : > { %v838_v33 = vmul.f32 %v837_v2, %v1677_v55  ;;  %v1012_v4 = vsel %vm995_vm1, %v1011_v3, %v837_v2 }
 0x3ca   : > { %840 = vrot.lane.b32.xlu0 %v838_v33, %s1475_s22 }
 0x3ce   : > { %852 = vrot.lane.b32.xlu0 %v850_v5, %s1475_s22 }
 0x3d2   : > { %866 = vperm.xlu0 %1394, %v1653_v34  }
 0x3d6   : > { %1395 = vset.pattern.permute.xlu0 %v1508_v6 }
 0x3d7   : > { %880 = vperm.xlu0 %1395, %v1653_v34  }
 0x3db   : > { %1396 = vset.pattern.permute.xlu0 %v1509_v8 }
 0x3dc   : > { %931 = vperm.xlu0 %1396, %v1653_v34  }
 0x3e0   : > { %1397 = vset.pattern.permute.xlu0 %v1510_v20 }
 0x3e1   : > { %945 = vperm.xlu0 %1397, %v1653_v34  }
 0x3e5   : > { %917 = vrot.lane.b32.xlu0 %v915_v9, %s1475_s22 }
 0x3e6   : > { %1398 = vset.pattern.permute.xlu0 %v1506_v35  ;;  %v897_v35 = vmul.f32 %v895_v53, %v1640_v19 }
 0x3e9   : > { %964 = vrot.lane.b32.xlu0 %v962_v11, %s1476_s29 }
 0x3ed   : > { %982 = vrot.lane.b32.xlu0 %v980_v12, %s1475_s22 }
 0x43c   : > { %v841_v0 = vpop.permute.xlu0 %840 }
 0x43d   : > { %v843_v13 = vsel %vm355_vm0, %v841_v0, 0.0 }
 0x43e   : > { %844 = vadd.xlane.f32.xlu1 %v843_v13 }
 0x440   : > { %v853_v63 = vpop.permute.xlu0 %852 }
 0x441   : > { %v855_v14 = vadd.f32 %v853_v63, %v1744_v48 }
 0x443   : > { %v856_v17 = vmul.f32 %v855_v14, %v1650_v32  ;;  %v1013_v18 = vsel %vm997_vm2, %v1012_v4, %v855_v14 }
 0x444   : > { %1100 = vst [vmem:[%s1783_s19 + $0x28] sm:$0xff] %v1013_v18 }
 0x445   : > { %858 = vrot.lane.b32.xlu0 %v856_v17, %s1476_s29 }
 0x44d   : > { %v867_v22 = vpop.permute.xlu0 %866 }
 0x44e   : > { %v869_v24 = vmul.f32 %v867_v22, %v1640_v19 }
 0x44f   : > { %899 = vrot.lane.b32.xlu1 %v897_v35, %s1476_s29 }
 0x450   : > { %871 = vrot.lane.b32.xlu0 %v869_v24, %s1477_s8  ;;  %v1071_v24 = vld [vmem:[%s324_s21] sm:$0xff]  ;;  %s1105_s21 = scalar_lea.sflag [#allocation3], %s296_s15 }
 0x452   : > { %v881_v25 = vpop.permute.xlu0 %880 }
 0x453   : > { %v883_v40 = vmul.f32 %v881_v25, %v1640_v19  ;;  %v1072_v25 = vmul.f32 %v1071_v24, %v1679_v56 }
 0x455   : > { %v884_v43 = vadd.f32 %v883_v40, %v864_v37 }
 0x457   : > { %v932_v26 = vpop.permute.xlu0 %931 }
 0x458   : > { %v934_v23 = vmul.f32 %v932_v26, %v1640_v19 }
 0x45c   : > { %v946_v28 = vpop.permute.xlu0 %945 }
 0x45d   : > { %v948_v59 = vmul.f32 %v946_v28, %v1640_v19 }
 0x45f   : > { %v949_v61 = vadd.f32 %v948_v59, %v929_v51 }
 0x460   : > { %v918_v48 = vpop.permute.xlu0 %917 }
 0x461   : > { %v920_v45 = vadd.f32 %v918_v48, %v864_v37  ;;  %v950_v16 = vmul.f32 %v949_v61, %v1648_v31 }
 0x463   : > { %v921_v52 = vmul.f32 %v920_v45, %v1650_v32 }
 0x464   : > { %v965_v29 = vpop.permute.xlu0 %964 }
 0x465   : > { %v967_v57 = vadd.f32 %v965_v29, %v929_v51 }
 0x467   : > { %v968_v58 = vmul.f32 %v967_v57, %v1677_v55 }
 0x468   : > { %v983_v7 = vpop.permute.xlu0 %982 }
 0x469   : > { %v985_v62 = vadd.f32 %v983_v7, %v929_v51 }
 0x46b   : > { %v986_v1 = vmul.f32 %v985_v62, %v1650_v32 }
 0x4b7   : > { %v859_v30 = vpop.permute.xlu0 %858 }
 0x4b8   : > { %v861_v36 = vsel %vm355_vm0, %v859_v30, 0.0 }
 0x4b9   : > { %862 = vadd.xlane.f32.xlu1 %v861_v36 }
 0x4c2   : > { %v872_v38 = vpop.permute.xlu0 %871 }
 0x4c3   : > { %v874_v21 = vadd.f32 %v872_v38, %v864_v37 }
 0x4c5   : > { %v875_v39 = vmul.f32 %v874_v21, %v1640_v19  ;;  %v1014_v46 = vsel %vm355_vm0, %v874_v21, %v884_v43 }
 0x4c7   : > { %v845_v41 = vpop.xlane.xlu1 %844  ;;  %v876_v27 = vsel %vm355_vm0, %v875_v39, 0.0 }
 0x4c8   : > { %v1055_v42 = vsel %vm1030_vm8, %v1054_v60, %v845_v41  ;;  %877 = vadd.xlane.f32.xlu0 %v876_v27  ;;  %v885_v60 = vmul.f32 %v884_v43, %v1648_v31 }
 0x4ca   : > { %936 = vrot.lane.b32.xlu1 %v934_v23, %s1477_s8 }
 0x4cb   : > { %v900_v44 = vpop.permute.xlu1 %899 }
 0x4cc   : > { %v902_v15 = vadd.f32 %v900_v44, %v864_v37 }
 0x4ce   : > { %v903_v47 = vmul.f32 %v902_v15, %v1677_v55  ;;  %v1015_v49 = vsel %vm995_vm1, %v1014_v46, %v902_v15 }
 0x4cf   : > { %v1016_v50 = vsel %vm997_vm2, %v1015_v49, %v920_v45  ;;  %v1278_v49 = vmul.f32 -1.442695, %v1640_v19 }
 0x4d0   : > { %1101 = vst [vmem:[%s1783_s19 + $0x30] sm:$0xff] %v1016_v50  ;;  %905 = vrot.lane.b32.xlu1 %v903_v47, %s1475_s22 }
 0x4d4   : > { %923 = vrot.lane.b32.xlu1 %v921_v52, %s1476_s29 }
 0x4d8   : > { %970 = vrot.lane.b32.xlu1 %v968_v58, %s1475_s22 }
 0x4de   : > { %887 = vrot.lane.b32.xlu0 %v885_v60, %s1477_s8 }
 0x4e2   : > { %952 = vrot.lane.b32.xlu0 %v950_v16, %s1477_s8 }
 0x4e6   : > { %988 = vrot.lane.b32.xlu0 %v986_v1, %s1476_s29 }
 0x542   : > { %v863_v55 = vpop.xlane.xlu1 %862 }
 0x543   : > { %v1056_v2 = vsel %vm1032_vm9, %v1055_v42, %v863_v55 }
 0x546   : > { %v937_v3 = vpop.permute.xlu1 %936 }
 0x547   : > { %v939_v33 = vadd.f32 %v937_v3, %v929_v51 }
 0x549   : > { %v1017_v4 = vsel %vm355_vm0, %v939_v33, %v949_v61  ;;  %v940_v11 = vmul.f32 %v939_v33, %v1640_v19 }
 0x54a   : > { %v1018_v5 = vsel %vm995_vm1, %v1017_v4, %v967_v57  ;;  %v906_v6 = vpop.permute.xlu1 %905  ;;  %vm1069_vm1 = vcmask 130048  }
 0x54b   : > { %v1019_v8 = vsel %vm997_vm2, %v1018_v5, %v985_v62  ;;  %v908_v31 = vsel %vm355_vm0, %v906_v6, 0.0  ;;  %v941_v0 = vsel %vm355_vm0, %v940_v11, 0.0 }
 0x54c   : > { %1102 = vst [vmem:[%s1783_s19 + $0x38] sm:$0xff] %v1019_v8  ;;  %909 = vadd.xlane.f32.xlu0 %v908_v31  ;;  %s1127_s19 = sshll.u32 %s298_s18, 4  ;;  %s1128_s19 = int_to_ptr.vmem [resolvable:$true] %s1127_s19 }
 0x54d   : > { %s1411_s22 = scalar_lea.vmem %s1128_s19, 128 }
 0x54e   : > { %v924_v10 = vpop.permute.xlu1 %923  ;;  %p1412_p11 = scmp.ne.s32.totalorder %s1128_s19, %s1411_s22 }
 0x54f   : > { %v926_v12 = vsel %vm355_vm0, %v924_v10, 0.0 }
 0x550   : > { %p1413_p12 = pnand %p1412_p11, %p1591_p5 }
 0x551   : > { %v878_v53 = vpop.xlane.xlu0 %877 }
 0x552   : > { %v1057_v32 = vsel %vm1034_vm10, %v1056_v2, %v878_v53  ;;  %v971_v14 = vpop.permute.xlu1 %970  ;;  %p1414_p13 = pneg %p1413_p12 }
 0x553   : > { %v973_v17 = vsel %vm355_vm0, %v971_v14, 0.0 }
 0x555   : > { %v888_v20 = vpop.permute.xlu0 %887 }
 0x556   : > { %v890_v9 = vsel %vm355_vm0, %v888_v20, 0.0 }
 0x557   : > { %891 = vadd.xlane.f32.xlu1 %v890_v9 }
 0x559   : > { %v953_v13 = vpop.permute.xlu0 %952 }
 0x55a   : > { %v955_v63 = vsel %vm355_vm0, %v953_v13, 0.0 }
 0x55b   : > { %927 = vadd.xlane.f32.xlu1 %v926_v12 }
 0x55d   : > { %v989_v18 = vpop.permute.xlu0 %988 }
 0x55e   : > { %v991_v35 = vsel %vm355_vm0, %v989_v18, 0.0 }
 0x55f   : > { %942 = vadd.xlane.f32.xlu1 %v941_v0 }
 0x562   : > { %1073 = vrot.lane.b32.xlu0 %v1653_v34, %s1477_s8 }
 0x563   : > { %956 = vadd.xlane.f32.xlu1 %v955_v63 }
 0x567   : > { %974 = vadd.xlane.f32.xlu1 %v973_v17 }
 0x56b   : > { %992 = vadd.xlane.f32.xlu1 %v991_v35 }
 0x5d5   : > { %v910_v22 = vpop.xlane.xlu0 %909 }
 0x5d9   : > { %v1074_v34 = vpop.permute.xlu0 %1073 }
 0x5da   : > { %v1076_v26 = vadd.f32 %v1074_v34, %v1072_v25 }
 0x5dc   : > { %v1077_v28 = vmul.f32 %v1076_v26, %v1640_v19  ;;  %1103 = vst.msk [vmem:[%s333_s13] sm:$0xff] %vm355_vm0, %v1076_v26 }
 0x5de   : > { %v1078_v48 = vsel %vm355_vm0, %v1077_v28, 0.0 }
 0x5df   : > { %1079 = vadd.xlane.f32.xlu1 %v1078_v48 }
 0x5e0   : > { %v892_v29 = vpop.xlane.xlu1 %891 }
 0x5e1   : > { %v1058_v37 = vsel %vm1036_vm11, %v1057_v32, %v892_v29 }
 0x5e2   : > { %v1059_v56 = vsel %vm1038_vm12, %v1058_v37, %v910_v22 }
 0x5e4   : > { %v928_v7 = vpop.xlane.xlu1 %927 }
 0x5e5   : > { %v1060_v21 = vsel %vm1040_vm13, %v1059_v56, %v928_v7 }
 0x5e8   : > { %v943_v30 = vpop.xlane.xlu1 %942 }
 0x5e9   : > { %v1061_v39 = vsel %vm1042_vm14, %v1060_v21, %v943_v30 }
 0x5ec   : > { %v957_v36 = vpop.xlane.xlu1 %956 }
 0x5ed   : > { %v1062_v40 = vsel %vm1044_vm15, %v1061_v39, %v957_v36 }
 0x5f0   : > { %v975_v38 = vpop.xlane.xlu1 %974 }
 0x5f1   : > { %v1063_v41 = vsel %vm1046_vm3, %v1062_v40, %v975_v38 }
 0x5f4   : > { %v993_v27 = vpop.xlane.xlu1 %992 }
 0x5f5   : > { %v1064_v23 = vsel %vm1048_vm4, %v1063_v41, %v993_v27 }
 0x5f6   : > { %1066 = vrot.lane.b32.xlu0 %v1064_v23, %s1511_s14 }
 0x668   : > { %v1080_v42 = vpop.xlane.xlu1 %1079  ;;  %v1067_v15 = vpop.permute.xlu0 %1066 }
 0x669   : > { %v1081_v43 = vand.u32 2147483647, %v1080_v42  ;;  %v1070_v46 = vsel %vm1069_vm1, %v1902_v54, %v1067_v15 }
 0x66b   : > { %v1082_v44 = vmax.f32 %v1081_v43, 1.0 }
 0x66d   : > { %1405 = vrcp.f32 %v1082_v44 }
 0x66e   : > { %1407 = vpow2.f32 %v1278_v49 }
 0x67a   : > { %v1406_v45 = vpop.eup %1405 }
 0x67b   : > { %v1084_v47 = vmul.f32 %v1406_v45, %v1070_v46  ;;  %v1408_v50 = vpop.eup %1407 }
 0x67c   : > { %v433_v51 = vadd.f32 1.0, %v1408_v50 }
 0x67d   : > { %1086 = vrot.lane.b32.xlu0 %v1084_v47, %s1477_s8  ;;  %s2009_s8 = scalar_lea.hbm %s2050_s5, %s1281_s17 }
 0x67e   : > { %1409 = vrcp.f32 %v433_v51 }
 0x68b   : > { %v1410_v52 = vpop.eup %1409 }
 0x6ef   : > { %v1087_v57 = vpop.permute.xlu0 %1086 }
 0x6f0   : > { %v1089_v58 = vmul.f32 %v1410_v52, %v1087_v57 }
 0x6f2   : > { %1091 = vrot.lane.b32.xlu1 %v1089_v58, %s1476_s29  ;;  %s1512_s29 = smov [#allocation2]  }
 0x6f3   : > { %s1415_s9 = sshll.u32 %s1512_s29, 4  ;;  %s1416_s9 = int_to_ptr.vmem [resolvable:$false] %s1415_s9 }
 0x6f4   : > { %s1417_s28 = scalar_lea.vmem %s1416_s9, 256  ;;  %p1418_p0 = scmp.lt.s32.totalorder %s1128_s19, %s1416_s9 }
 0x6f5   : > { %p1419_p1 = scmp.lt.s32.totalorder %s1417_s28, %s1411_s22 }
 0x6f7   : > { %p1420_p2 = por %p1419_p1, %p1418_p0 }
 0x6f9   : > { %p1421_p3 = pnand %p1420_p2, %p1414_p13 }
 0x764   : > { %v1092_v19 = vpop.permute.xlu1 %1091 }
 0x765   : > { %1094 = vst.msk [vmem:[%s298_s18] sm:$0xff] %vm355_vm0, %v1092_v19 }
 0x766   : > { %1424 = shalt.err (!%p1421_p3)
}
 0x767   : > { %s1425_s13 = scalar_lea.hbm %s2009_s8, 128  ;;  %s1429_s16 = scalar_lea.hbm %s2050_s5, 512 }
 0x768   : > { %p1426_p4 = scmp.ne.s32.totalorder %s2009_s8, %s1425_s13  ;;  %p1430_p9 = scmp.lt.s32.totalorder %s2009_s8, %s2050_s5 }
 0x769   : > { %p1431_p10 = scmp.lt.s32.totalorder %s1429_s16, %s1425_s13 }
 0x76a   : > { %p1427_p7 = pnand %p1426_p4, %p1591_p5 }
 0x76b   : > { %p1432_p11 = por %p1431_p10, %p1430_p9 }
 0x76c   : > { %p1428_p8 = pneg %p1427_p7 }
 0x76e   : > { %p1433_p12 = pnand %p1432_p11, %p1428_p8 }
 0x770   : > { %1436 = shalt.err (!%p1433_p12)
}
 0x771   : > { %1286 = dma.vmem_to_hbm [thread:$0]  (%p1591_p5), %s1128_s19, 128, %s2009_s8, %s1105_s21  }
 0x772 PF: > { %p1292_p13 = scmp.ge.s32.totalorder %s1471_s27, 2  ;;  %s1145_s23 = sand.u32 1, %s1459_s24  }
 0x773   : > { %s1146_s20 = scalar_lea.sflag [#allocation3], %s1145_s23 }
 0x774   : > { %p1289_p0 = pnand %p1292_p13, %p1595_p6 }
 0x776   : > { %p1290_p1 = pneg %p1289_p0 }
 0x778   : > { %1454 = dma.done.wait (%p1290_p1), %s1146_s20, 128  }
 0x779   : > { %1456 = vsyncadd (%p1290_p1), %s1146_s20, 4294967168  ;;  %p18_p2 = scmp.ge.s32.totalorder %s1578_s30, 6   ;;  %s2055_s24 = smov %s1463_s25 }
 0x77a   : > { %s2056_s25 = smov %s1467_s26  ;;  %s2057_s26 = smov %s1589_s10 }
 0x77b   : > { %s2058_s27 = smov %s1578_s30  ;;  %20 = sbr.rel (!%p18_p2) target bundleno = 3 (0x3), region = 105 }
 0x780   :  { %1166 = vsyncpa [#allocation3], 1 }
 0x781   :  { %1168 = vsyncpa [#allocation3 + $0x1], 1 }

</bundles_post_ra>
